<compile_context>
chip_gen: v6e
topology: v6e:2x2x1
jax: 0.10.0
libtpu: 0.0.40
codegen_flags: <defaults>
</compile_context>

<pallas_src>
import functools
import math

import numpy as np
import jax
import jax.numpy as jnp
from jax.experimental import pallas as pl
from jax.experimental.pallas import tpu as pltpu


def _layernorm(x, w, b, eps=1e-5):
    mu = jnp.mean(x, axis=-1, keepdims=True)
    xc = x - mu
    var = jnp.mean(xc * xc, axis=-1, keepdims=True)
    return xc * jax.lax.rsqrt(var + eps) * w + b


def transformer_block_kernel(
    y_ref, mask_ref,
    ln1w_ref, ln1b_ref,
    wq_ref, bq_ref, wk_ref, bk_ref, wv_ref, bv_ref, wo_ref, bo_ref,
    ln2w_ref, ln2b_ref,
    w1a_ref, b1a_ref, w1g_ref, b1g_ref, w2_ref, b2_ref,
    out_ref,
    *, H,
):
    E = y_ref.shape[-1]
    Dh = E // H

    y = y_ref[...]                                   # (TR, E) f32, rotary already applied
    y_bf = y.astype(jnp.bfloat16)

    # --- norm1: applied to the query path only (faithful to the reference;
    # k/v are projected from the un-normalized rotated activation) ---
    qn = _layernorm(y, ln1w_ref[...], ln1b_ref[...]).astype(jnp.bfloat16)

    # --- multi-head attention in-projections (bf16 MXU, f32 accumulate) ---
    q = jnp.dot(qn,  wq_ref[...], preferred_element_type=jnp.float32) + bq_ref[...]
    k = jnp.dot(y_bf, wk_ref[...], preferred_element_type=jnp.float32) + bk_ref[...]
    v = jnp.dot(y_bf, wv_ref[...], preferred_element_type=jnp.float32) + bv_ref[...]

    scale = 1.0 / math.sqrt(Dh)
    mask = mask_ref[...]                             # (TR, TR) block-diag additive mask

    # One batched (TR, TR) score contraction per head; the block-diagonal mask
    # confines mixing to each s-group inside the tile.
    heads = []
    for h in range(H):
        csl = slice(h * Dh, (h + 1) * Dh)
        qh = (q[:, csl] * scale).astype(jnp.bfloat16)          # (TR, Dh)
        kh = k[:, csl].astype(jnp.bfloat16)
        vh = v[:, csl].astype(jnp.bfloat16)
        sc = jax.lax.dot_general(qh, kh, (((1,), (1,)), ((), ())),
                                 preferred_element_type=jnp.float32)  # (TR, TR)
        sc = sc + mask
        m = jnp.max(sc, axis=-1, keepdims=True)
        p = jnp.exp(sc - m)
        p = p * pl.reciprocal(jnp.sum(p, axis=-1, keepdims=True), approx=True)
        heads.append(jnp.dot(p.astype(jnp.bfloat16), vh,
                             preferred_element_type=jnp.float32))     # (TR, Dh)

    attn_heads = jnp.concatenate(heads, axis=-1)                      # (TR, E) lane-dense
    attn = jnp.dot(attn_heads.astype(jnp.bfloat16), wo_ref[...],
                   preferred_element_type=jnp.float32) + bo_ref[...]

    # --- residual 1 (dropout == identity); adds the rotated query ---
    x2 = attn + y

    # --- norm2 + SwiGLU feed-forward (split value/gate matmuls) ---
    x2n = _layernorm(x2, ln2w_ref[...], ln2b_ref[...]).astype(jnp.bfloat16)
    a = jnp.dot(x2n, w1a_ref[...], preferred_element_type=jnp.float32) + b1a_ref[...]
    g = jnp.dot(x2n, w1g_ref[...], preferred_element_type=jnp.float32) + b1g_ref[...]
    sig = pl.reciprocal(1.0 + jnp.exp(-g), approx=True)               # EUP slot
    sw = (a * g * sig).astype(jnp.bfloat16)                           # a * silu(g)
    ff = jnp.dot(sw, w2_ref[...], preferred_element_type=jnp.float32) + b2_ref[...]

    # --- residual 2 (dropout == identity) ---
    out_ref[...] = ff + x2


def transformer_block_pallas(y2d, big_mask, lp, *, heads, tile_rows):
    SN, E = y2d.shape
    TR = tile_rows
    num_tiles = SN // TR
    kernel = functools.partial(transformer_block_kernel, H=heads)

    def full_spec(arr):
        return pl.BlockSpec(arr.shape, lambda i: (0,) * arr.ndim)

    weights = (
        lp['ln1_w'], lp['ln1_b'],
        lp['wq'], lp['bq'], lp['wk'], lp['bk'], lp['wv'], lp['bv'],
        lp['wo'], lp['bo'],
        lp['ln2_w'], lp['ln2_b'],
        lp['w1a'], lp['b1a'], lp['w1g'], lp['b1g'],
        lp['w2'], lp['b2'],
    )
    in_specs = (
        [pl.BlockSpec((TR, E), lambda i: (i, 0)),      # activation row tile
         pl.BlockSpec((TR, TR), lambda i: (0, 0))]     # block-diag mask (constant)
        + [full_spec(w) for w in weights]              # weights: constant full blocks
    )
    return pl.pallas_call(
        kernel,
        out_shape=jax.ShapeDtypeStruct((SN, E), jnp.float32),
        grid_spec=pltpu.PrefetchScalarGridSpec(
            num_scalar_prefetch=0,
            grid=(num_tiles,),
            in_specs=in_specs,
            out_specs=pl.BlockSpec((TR, E), lambda i: (i, 0)),
        ),
        compiler_params=pltpu.CompilerParams(
            dimension_semantics=("parallel",),          # megacore split on v7x
            vmem_limit_bytes=32 * 1024 * 1024,
        ),
    )(y2d, big_mask, *weights)


def rotary_tables(seq_len, embed_size, base=10000.0):
    # Reproduces RotaryPositionalEncoding(embed_size // 2) + the sin/cos
    # extraction inside apply_rotary_pos_emb (chunk + repeat_interleave).
    dim = embed_size // 2
    inv_freq = 1.0 / (base ** (np.arange(0, dim, 2, dtype=np.float32) / dim))
    t = np.arange(seq_len, dtype=np.float32)
    freqs = np.einsum('i,j->ij', t, inv_freq)                    # (S, E//4)
    emb = np.concatenate([freqs, freqs], axis=-1)                # (S, E//2)
    sincos = np.stack([np.sin(emb), np.cos(emb)], axis=-1).reshape(
        seq_len, embed_size)                                     # (S, E)
    half = embed_size // 2
    sin = np.repeat(sincos[:, :half], 2, axis=-1)                # (S, E)
    cos = np.repeat(sincos[:, half:], 2, axis=-1)                # (S, E)
    return jnp.asarray(sin), jnp.asarray(cos)


def build_block_mask(mask, tile_rows, neg=-1e30):
    # (N, N) additive attn_mask -> (TR, TR) block-diagonal additive mask over
    # the TR//N s-groups inside one row tile (off-block entries masked out).
    n = mask.shape[0]
    groups = tile_rows // n
    idx = jnp.arange(tile_rows)
    same_group = (idx[:, None] // n) == (idx[None, :] // n)
    tiled = jnp.tile(mask.astype(jnp.float32), (groups, groups))
    return jnp.where(same_group, tiled, jnp.float32(neg))


def init_params(key, vocab, E, num_layers, H, F, max_length):
    keys = jax.random.split(key, 2 + num_layers)
    hidden = F * E
    half = hidden // 2

    def lin(k, fan_in, fan_out):
        bound = 1.0 / math.sqrt(fan_in)
        # stored as (in, out) so the kernel computes x @ W + b
        return jax.random.uniform(k, (fan_in, fan_out), jnp.float32, -bound, bound)

    params = {
        'word_emb': jax.random.normal(keys[0], (vocab, E), jnp.float32) * 0.02,
        'pos_emb': jax.random.normal(keys[1], (max_length, E), jnp.float32) * 0.02,
        'layers': [],
    }
    for l in range(num_layers):
        lk = jax.random.split(keys[2 + l], 6)
        w1 = lin(lk[4], E, hidden)
        b1 = jnp.zeros((1, hidden), jnp.float32)
        lp = {
            'ln1_w': jnp.ones((1, E), jnp.float32),
            'ln1_b': jnp.zeros((1, E), jnp.float32),
            # matmul weights stored bf16 (MXU operands); biases/LN params f32
            'wq': lin(lk[0], E, E).astype(jnp.bfloat16), 'bq': jnp.zeros((1, E), jnp.float32),
            'wk': lin(lk[1], E, E).astype(jnp.bfloat16), 'bk': jnp.zeros((1, E), jnp.float32),
            'wv': lin(lk[2], E, E).astype(jnp.bfloat16), 'bv': jnp.zeros((1, E), jnp.float32),
            'wo': lin(lk[3], E, E).astype(jnp.bfloat16), 'bo': jnp.zeros((1, E), jnp.float32),
            'ln2_w': jnp.ones((1, E), jnp.float32),
            'ln2_b': jnp.zeros((1, E), jnp.float32),
            # SwiGLU value/gate halves kept as separate matrices (lane-dense halves)
            'w1a': w1[:, :half].astype(jnp.bfloat16), 'b1a': b1[:, :half],
            'w1g': w1[:, half:].astype(jnp.bfloat16), 'b1g': b1[:, half:],
            # TODO(synk): reference declares nn.Linear(F*E, E) after SwiGLU, but SwiGLU
            # halves the feature dim to F*E//2 (the reference would shape-error);
            # we use the consistent (F*E//2 -> E) projection.
            'w2': lin(lk[5], half, E).astype(jnp.bfloat16),
            'b2': jnp.zeros((1, E), jnp.float32),
        }
        params['layers'].append(lp)
    return params


def encoder_forward(tokens, mask, params, heads, tile_rows=16):
    N, S = tokens.shape
    E = params['word_emb'].shape[1]

    # embeddings (plain-JAX glue; gather is not the hot path)
    h = params['word_emb'][tokens] + params['pos_emb'][jnp.arange(S)][None, :, :]
    h = h.astype(jnp.float32)                                    # (N, S, E)
    x = jnp.transpose(h, (1, 0, 2))                              # (S, N, E) s-major rows

    sin, cos = rotary_tables(S, E)                               # (S, E) tables
    cos3 = cos[:, None, :]                                       # broadcast over N
    sin3 = sin[:, None, :]

    TR = tile_rows                                               # rows per grid tile
    assert (S * N) % TR == 0 and TR % N == 0 and TR % 16 == 0, "bad tile_rows"
    big_mask = build_block_mask(mask, TR)

    for lp in params['layers']:
        # Rotary (incl. the full last-dim flip) is cheap elementwise XLA glue;
        # the reverse has no cheap in-kernel XLU equivalent, so it is hoisted.
        y = x * cos3 + jnp.flip(x, axis=-1) * sin3               # (S, N, E)
        y2d = y.reshape(S * N, E)
        out2d = transformer_block_pallas(y2d, big_mask, lp,
                                         heads=heads, tile_rows=TR)
        x = out2d.reshape(S, N, E)
    return jnp.transpose(x, (1, 0, 2))                           # back to (N, S, E)


if __name__ == "__main__":
    src_vocab_size = 50
    embed_size = 32
    num_layers = 2
    heads = 4
    forward_expansion = 2
    max_length = 16
    N, S = 2, 16          # S*N = 32 rows -> 2 row tiles of 16 (bf16-friendly)

    key = jax.random.PRNGKey(0)
    pkey, tkey = jax.random.split(key)
    params = init_params(pkey, src_vocab_size, embed_size, num_layers,
                         heads, forward_expansion, max_length)
    tokens = jax.random.randint(tkey, (N, S), 0, src_vocab_size, dtype=jnp.int32)
    # attn_mask: additive float mask of shape (L, L) = (N, N), since MHA with
    # batch_first=False attends over the encoder batch dim N (faithful quirk).
    mask = jnp.zeros((N, N), jnp.float32)

    out = encoder_forward(tokens, mask, params, heads, tile_rows=16)
    out = jax.block_until_ready(out)
    assert out.shape == (N, S, embed_size), out.shape
    assert bool(jnp.all(jnp.isfinite(out)))
    print("KERNEL_OK")
</pallas_src>

<mosaic_0001>
module attributes {stable_mosaic.version = 11 : i64} {
  func.func @transformer_block_kernel(%arg0: i32, %arg1: memref<16x32xf32, #tpu.memory_space<vmem>>, %arg2: memref<16x16xf32, #tpu.memory_space<vmem>>, %arg3: memref<1x32xf32, #tpu.memory_space<vmem>>, %arg4: memref<1x32xf32, #tpu.memory_space<vmem>>, %arg5: memref<32x32xbf16, #tpu.memory_space<vmem>>, %arg6: memref<1x32xf32, #tpu.memory_space<vmem>>, %arg7: memref<32x32xbf16, #tpu.memory_space<vmem>>, %arg8: memref<1x32xf32, #tpu.memory_space<vmem>>, %arg9: memref<32x32xbf16, #tpu.memory_space<vmem>>, %arg10: memref<1x32xf32, #tpu.memory_space<vmem>>, %arg11: memref<32x32xbf16, #tpu.memory_space<vmem>>, %arg12: memref<1x32xf32, #tpu.memory_space<vmem>>, %arg13: memref<1x32xf32, #tpu.memory_space<vmem>>, %arg14: memref<1x32xf32, #tpu.memory_space<vmem>>, %arg15: memref<32x32xbf16, #tpu.memory_space<vmem>>, %arg16: memref<1x32xf32, #tpu.memory_space<vmem>>, %arg17: memref<32x32xbf16, #tpu.memory_space<vmem>>, %arg18: memref<1x32xf32, #tpu.memory_space<vmem>>, %arg19: memref<32x32xbf16, #tpu.memory_space<vmem>>, %arg20: memref<1x32xf32, #tpu.memory_space<vmem>>, %arg21: memref<16x32xf32, #tpu.memory_space<vmem>>) attributes {dimension_semantics = [#tpu.dimension_semantics<parallel>], iteration_bounds = array<i64: 2>, scalar_prefetch = 0 : i64, scratch_operands = 0 : i64, tpu.core_type = #tpu.core_type<tc>, window_params = [{transform_indices = @transform_0, window_bounds = array<i64: 16, 32>}, {pipeline_mode = #tpu.pipeline_mode<synchronous>, transform_indices = @transform_1, window_bounds = array<i64: 16, 16>}, {pipeline_mode = #tpu.pipeline_mode<synchronous>, transform_indices = @transform_2, window_bounds = array<i64: 1, 32>}, {pipeline_mode = #tpu.pipeline_mode<synchronous>, transform_indices = @transform_3, window_bounds = array<i64: 1, 32>}, {pipeline_mode = #tpu.pipeline_mode<synchronous>, transform_indices = @transform_4, window_bounds = array<i64: 32, 32>}, {pipeline_mode = #tpu.pipeline_mode<synchronous>, transform_indices = @transform_5, window_bounds = array<i64: 1, 32>}, {pipeline_mode = #tpu.pipeline_mode<synchronous>, transform_indices = @transform_6, window_bounds = array<i64: 32, 32>}, {pipeline_mode = #tpu.pipeline_mode<synchronous>, transform_indices = @transform_7, window_bounds = array<i64: 1, 32>}, {pipeline_mode = #tpu.pipeline_mode<synchronous>, transform_indices = @transform_8, window_bounds = array<i64: 32, 32>}, {pipeline_mode = #tpu.pipeline_mode<synchronous>, transform_indices = @transform_9, window_bounds = array<i64: 1, 32>}, {pipeline_mode = #tpu.pipeline_mode<synchronous>, transform_indices = @transform_10, window_bounds = array<i64: 32, 32>}, {pipeline_mode = #tpu.pipeline_mode<synchronous>, transform_indices = @transform_11, window_bounds = array<i64: 1, 32>}, {pipeline_mode = #tpu.pipeline_mode<synchronous>, transform_indices = @transform_12, window_bounds = array<i64: 1, 32>}, {pipeline_mode = #tpu.pipeline_mode<synchronous>, transform_indices = @transform_13, window_bounds = array<i64: 1, 32>}, {pipeline_mode = #tpu.pipeline_mode<synchronous>, transform_indices = @transform_14, window_bounds = array<i64: 32, 32>}, {pipeline_mode = #tpu.pipeline_mode<synchronous>, transform_indices = @transform_15, window_bounds = array<i64: 1, 32>}, {pipeline_mode = #tpu.pipeline_mode<synchronous>, transform_indices = @transform_16, window_bounds = array<i64: 32, 32>}, {pipeline_mode = #tpu.pipeline_mode<synchronous>, transform_indices = @transform_17, window_bounds = array<i64: 1, 32>}, {pipeline_mode = #tpu.pipeline_mode<synchronous>, transform_indices = @transform_18, window_bounds = array<i64: 32, 32>}, {pipeline_mode = #tpu.pipeline_mode<synchronous>, transform_indices = @transform_19, window_bounds = array<i64: 1, 32>}, {transform_indices = @transform_20, window_bounds = array<i64: 16, 32>}]} {
    %c0 = arith.constant 0 : index
    %c0_0 = arith.constant 0 : index
    %0 = vector.load %arg1[%c0, %c0_0] : memref<16x32xf32, #tpu.memory_space<vmem>>, vector<16x32xf32>
    %1 = arith.truncf %0 : vector<16x32xf32> to vector<16x32xbf16>
    %c0_1 = arith.constant 0 : index
    %c0_2 = arith.constant 0 : index
    %2 = vector.load %arg3[%c0_1, %c0_2] : memref<1x32xf32, #tpu.memory_space<vmem>>, vector<1x32xf32>
    %c0_3 = arith.constant 0 : index
    %c0_4 = arith.constant 0 : index
    %3 = vector.load %arg4[%c0_3, %c0_4] : memref<1x32xf32, #tpu.memory_space<vmem>>, vector<1x32xf32>
    %cst = arith.constant dense<0.000000e+00> : vector<16xf32>
    %4 = vector.multi_reduction <add>, %0, %cst [1] : vector<16x32xf32> to vector<16xf32>
    %5 = vector.shape_cast %4 : vector<16xf32> to vector<16x1xf32>
    %cst_5 = arith.constant 3.200000e+01 : f32
    %6 = vector.broadcast %cst_5 : f32 to vector<16x1xf32>
    %7 = arith.divf %5, %6 : vector<16x1xf32>
    %8 = vector.broadcast %7 : vector<16x1xf32> to vector<16x32xf32>
    %9 = arith.subf %0, %8 : vector<16x32xf32>
    %10 = arith.mulf %9, %9 : vector<16x32xf32>
    %cst_6 = arith.constant dense<0.000000e+00> : vector<16xf32>
    %11 = vector.multi_reduction <add>, %10, %cst_6 [1] : vector<16x32xf32> to vector<16xf32>
    %12 = vector.shape_cast %11 : vector<16xf32> to vector<16x1xf32>
    %cst_7 = arith.constant 3.200000e+01 : f32
    %13 = vector.broadcast %cst_7 : f32 to vector<16x1xf32>
    %14 = arith.divf %12, %13 : vector<16x1xf32>
    %cst_8 = arith.constant 9.99999974E-6 : f32
    %15 = vector.broadcast %cst_8 : f32 to vector<16x1xf32>
    %16 = arith.addf %14, %15 : vector<16x1xf32>
    %17 = math.rsqrt %16 : vector<16x1xf32>
    %18 = vector.broadcast %17 : vector<16x1xf32> to vector<16x32xf32>
    %19 = arith.mulf %9, %18 : vector<16x32xf32>
    %20 = vector.broadcast %2 : vector<1x32xf32> to vector<16x32xf32>
    %21 = arith.mulf %19, %20 : vector<16x32xf32>
    %22 = vector.broadcast %3 : vector<1x32xf32> to vector<16x32xf32>
    %23 = arith.addf %21, %22 : vector<16x32xf32>
    %24 = arith.truncf %23 : vector<16x32xf32> to vector<16x32xbf16>
    %c0_9 = arith.constant 0 : index
    %c0_10 = arith.constant 0 : index
    %25 = vector.load %arg5[%c0_9, %c0_10] : memref<32x32xbf16, #tpu.memory_space<vmem>>, vector<32x32xbf16>
    %cst_11 = arith.constant dense<0.000000e+00> : vector<16x32xf32>
    %26 = tpu.matmul %24, %25, %cst_11 {dimension_numbers = #tpu.dot_dimension_numbers<[1], [0], [0], [1], [0, 0, 1, 1], [], []>} : vector<16x32xbf16>, vector<32x32xbf16>, vector<16x32xf32> -> vector<16x32xf32>
    %c0_12 = arith.constant 0 : index
    %c0_13 = arith.constant 0 : index
    %27 = vector.load %arg6[%c0_12, %c0_13] : memref<1x32xf32, #tpu.memory_space<vmem>>, vector<1x32xf32>
    %28 = vector.broadcast %27 : vector<1x32xf32> to vector<16x32xf32>
    %29 = arith.addf %26, %28 : vector<16x32xf32>
    %c0_14 = arith.constant 0 : index
    %c0_15 = arith.constant 0 : index
    %30 = vector.load %arg7[%c0_14, %c0_15] : memref<32x32xbf16, #tpu.memory_space<vmem>>, vector<32x32xbf16>
    %cst_16 = arith.constant dense<0.000000e+00> : vector<16x32xf32>
    %31 = tpu.matmul %1, %30, %cst_16 {dimension_numbers = #tpu.dot_dimension_numbers<[1], [0], [0], [1], [0, 0, 1, 1], [], []>} : vector<16x32xbf16>, vector<32x32xbf16>, vector<16x32xf32> -> vector<16x32xf32>
    %c0_17 = arith.constant 0 : index
    %c0_18 = arith.constant 0 : index
    %32 = vector.load %arg8[%c0_17, %c0_18] : memref<1x32xf32, #tpu.memory_space<vmem>>, vector<1x32xf32>
    %33 = vector.broadcast %32 : vector<1x32xf32> to vector<16x32xf32>
    %34 = arith.addf %31, %33 : vector<16x32xf32>
    %c0_19 = arith.constant 0 : index
    %c0_20 = arith.constant 0 : index
    %35 = vector.load %arg9[%c0_19, %c0_20] : memref<32x32xbf16, #tpu.memory_space<vmem>>, vector<32x32xbf16>
    %cst_21 = arith.constant dense<0.000000e+00> : vector<16x32xf32>
    %36 = tpu.matmul %1, %35, %cst_21 {dimension_numbers = #tpu.dot_dimension_numbers<[1], [0], [0], [1], [0, 0, 1, 1], [], []>} : vector<16x32xbf16>, vector<32x32xbf16>, vector<16x32xf32> -> vector<16x32xf32>
    %c0_22 = arith.constant 0 : index
    %c0_23 = arith.constant 0 : index
    %37 = vector.load %arg10[%c0_22, %c0_23] : memref<1x32xf32, #tpu.memory_space<vmem>>, vector<1x32xf32>
    %38 = vector.broadcast %37 : vector<1x32xf32> to vector<16x32xf32>
    %39 = arith.addf %36, %38 : vector<16x32xf32>
    %c0_24 = arith.constant 0 : index
    %c0_25 = arith.constant 0 : index
    %40 = vector.load %arg2[%c0_24, %c0_25] : memref<16x16xf32, #tpu.memory_space<vmem>>, vector<16x16xf32>
    %41 = vector.extract_strided_slice %29 {offsets = [0, 0], sizes = [16, 8], strides = [1, 1]} : vector<16x32xf32> to vector<16x8xf32>
    %cst_26 = arith.constant 0.353553385 : f32
    %42 = vector.broadcast %cst_26 : f32 to vector<16x8xf32>
    %43 = arith.mulf %41, %42 : vector<16x8xf32>
    %44 = arith.truncf %43 : vector<16x8xf32> to vector<16x8xbf16>
    %45 = vector.extract_strided_slice %34 {offsets = [0, 0], sizes = [16, 8], strides = [1, 1]} : vector<16x32xf32> to vector<16x8xf32>
    %46 = arith.truncf %45 : vector<16x8xf32> to vector<16x8xbf16>
    %47 = vector.extract_strided_slice %39 {offsets = [0, 0], sizes = [16, 8], strides = [1, 1]} : vector<16x32xf32> to vector<16x8xf32>
    %48 = arith.truncf %47 : vector<16x8xf32> to vector<16x8xbf16>
    %cst_27 = arith.constant dense<0.000000e+00> : vector<16x16xf32>
    %49 = tpu.matmul %44, %46, %cst_27 {dimension_numbers = #tpu.dot_dimension_numbers<[1], [1], [0], [0], [0, 0, 1, 0], [], []>} : vector<16x8xbf16>, vector<16x8xbf16>, vector<16x16xf32> -> vector<16x16xf32>
    %50 = arith.addf %49, %40 : vector<16x16xf32>
    %cst_28 = arith.constant dense<0xFF800000> : vector<16xf32>
    %51 = vector.multi_reduction <maximumf>, %50, %cst_28 [1] : vector<16x16xf32> to vector<16xf32>
    %52 = vector.shape_cast %51 : vector<16xf32> to vector<16x1xf32>
    %53 = vector.broadcast %52 : vector<16x1xf32> to vector<16x16xf32>
    %54 = arith.subf %50, %53 : vector<16x16xf32>
    %55 = math.exp %54 : vector<16x16xf32>
    %cst_29 = arith.constant dense<0.000000e+00> : vector<16xf32>
    %56 = vector.multi_reduction <add>, %55, %cst_29 [1] : vector<16x16xf32> to vector<16xf32>
    %57 = vector.shape_cast %56 : vector<16xf32> to vector<16x1xf32>
    %58 = tpu.reciprocal %57 {approx = true} : vector<16x1xf32> -> vector<16x1xf32>
    %59 = vector.broadcast %58 : vector<16x1xf32> to vector<16x16xf32>
    %60 = arith.mulf %55, %59 : vector<16x16xf32>
    %61 = arith.truncf %60 : vector<16x16xf32> to vector<16x16xbf16>
    %cst_30 = arith.constant dense<0.000000e+00> : vector<16x8xf32>
    %62 = tpu.matmul %61, %48, %cst_30 {dimension_numbers = #tpu.dot_dimension_numbers<[1], [0], [0], [1], [0, 0, 1, 1], [], []>} : vector<16x16xbf16>, vector<16x8xbf16>, vector<16x8xf32> -> vector<16x8xf32>
    %63 = vector.extract_strided_slice %29 {offsets = [0, 8], sizes = [16, 8], strides = [1, 1]} : vector<16x32xf32> to vector<16x8xf32>
    %cst_31 = arith.constant 0.353553385 : f32
    %64 = vector.broadcast %cst_31 : f32 to vector<16x8xf32>
    %65 = arith.mulf %63, %64 : vector<16x8xf32>
    %66 = arith.truncf %65 : vector<16x8xf32> to vector<16x8xbf16>
    %67 = vector.extract_strided_slice %34 {offsets = [0, 8], sizes = [16, 8], strides = [1, 1]} : vector<16x32xf32> to vector<16x8xf32>
    %68 = arith.truncf %67 : vector<16x8xf32> to vector<16x8xbf16>
    %69 = vector.extract_strided_slice %39 {offsets = [0, 8], sizes = [16, 8], strides = [1, 1]} : vector<16x32xf32> to vector<16x8xf32>
    %70 = arith.truncf %69 : vector<16x8xf32> to vector<16x8xbf16>
    %cst_32 = arith.constant dense<0.000000e+00> : vector<16x16xf32>
    %71 = tpu.matmul %66, %68, %cst_32 {dimension_numbers = #tpu.dot_dimension_numbers<[1], [1], [0], [0], [0, 0, 1, 0], [], []>} : vector<16x8xbf16>, vector<16x8xbf16>, vector<16x16xf32> -> vector<16x16xf32>
    %72 = arith.addf %71, %40 : vector<16x16xf32>
    %cst_33 = arith.constant dense<0xFF800000> : vector<16xf32>
    %73 = vector.multi_reduction <maximumf>, %72, %cst_33 [1] : vector<16x16xf32> to vector<16xf32>
    %74 = vector.shape_cast %73 : vector<16xf32> to vector<16x1xf32>
    %75 = vector.broadcast %74 : vector<16x1xf32> to vector<16x16xf32>
    %76 = arith.subf %72, %75 : vector<16x16xf32>
    %77 = math.exp %76 : vector<16x16xf32>
    %cst_34 = arith.constant dense<0.000000e+00> : vector<16xf32>
    %78 = vector.multi_reduction <add>, %77, %cst_34 [1] : vector<16x16xf32> to vector<16xf32>
    %79 = vector.shape_cast %78 : vector<16xf32> to vector<16x1xf32>
    %80 = tpu.reciprocal %79 {approx = true} : vector<16x1xf32> -> vector<16x1xf32>
    %81 = vector.broadcast %80 : vector<16x1xf32> to vector<16x16xf32>
    %82 = arith.mulf %77, %81 : vector<16x16xf32>
    %83 = arith.truncf %82 : vector<16x16xf32> to vector<16x16xbf16>
    %cst_35 = arith.constant dense<0.000000e+00> : vector<16x8xf32>
    %84 = tpu.matmul %83, %70, %cst_35 {dimension_numbers = #tpu.dot_dimension_numbers<[1], [0], [0], [1], [0, 0, 1, 1], [], []>} : vector<16x16xbf16>, vector<16x8xbf16>, vector<16x8xf32> -> vector<16x8xf32>
    %85 = vector.extract_strided_slice %29 {offsets = [0, 16], sizes = [16, 8], strides = [1, 1]} : vector<16x32xf32> to vector<16x8xf32>
    %cst_36 = arith.constant 0.353553385 : f32
    %86 = vector.broadcast %cst_36 : f32 to vector<16x8xf32>
    %87 = arith.mulf %85, %86 : vector<16x8xf32>
    %88 = arith.truncf %87 : vector<16x8xf32> to vector<16x8xbf16>
    %89 = vector.extract_strided_slice %34 {offsets = [0, 16], sizes = [16, 8], strides = [1, 1]} : vector<16x32xf32> to vector<16x8xf32>
    %90 = arith.truncf %89 : vector<16x8xf32> to vector<16x8xbf16>
    %91 = vector.extract_strided_slice %39 {offsets = [0, 16], sizes = [16, 8], strides = [1, 1]} : vector<16x32xf32> to vector<16x8xf32>
    %92 = arith.truncf %91 : vector<16x8xf32> to vector<16x8xbf16>
    %cst_37 = arith.constant dense<0.000000e+00> : vector<16x16xf32>
    %93 = tpu.matmul %88, %90, %cst_37 {dimension_numbers = #tpu.dot_dimension_numbers<[1], [1], [0], [0], [0, 0, 1, 0], [], []>} : vector<16x8xbf16>, vector<16x8xbf16>, vector<16x16xf32> -> vector<16x16xf32>
    %94 = arith.addf %93, %40 : vector<16x16xf32>
    %cst_38 = arith.constant dense<0xFF800000> : vector<16xf32>
    %95 = vector.multi_reduction <maximumf>, %94, %cst_38 [1] : vector<16x16xf32> to vector<16xf32>
    %96 = vector.shape_cast %95 : vector<16xf32> to vector<16x1xf32>
    %97 = vector.broadcast %96 : vector<16x1xf32> to vector<16x16xf32>
    %98 = arith.subf %94, %97 : vector<16x16xf32>
    %99 = math.exp %98 : vector<16x16xf32>
    %cst_39 = arith.constant dense<0.000000e+00> : vector<16xf32>
    %100 = vector.multi_reduction <add>, %99, %cst_39 [1] : vector<16x16xf32> to vector<16xf32>
    %101 = vector.shape_cast %100 : vector<16xf32> to vector<16x1xf32>
    %102 = tpu.reciprocal %101 {approx = true} : vector<16x1xf32> -> vector<16x1xf32>
    %103 = vector.broadcast %102 : vector<16x1xf32> to vector<16x16xf32>
    %104 = arith.mulf %99, %103 : vector<16x16xf32>
    %105 = arith.truncf %104 : vector<16x16xf32> to vector<16x16xbf16>
    %cst_40 = arith.constant dense<0.000000e+00> : vector<16x8xf32>
    %106 = tpu.matmul %105, %92, %cst_40 {dimension_numbers = #tpu.dot_dimension_numbers<[1], [0], [0], [1], [0, 0, 1, 1], [], []>} : vector<16x16xbf16>, vector<16x8xbf16>, vector<16x8xf32> -> vector<16x8xf32>
    %107 = vector.extract_strided_slice %29 {offsets = [0, 24], sizes = [16, 8], strides = [1, 1]} : vector<16x32xf32> to vector<16x8xf32>
    %cst_41 = arith.constant 0.353553385 : f32
    %108 = vector.broadcast %cst_41 : f32 to vector<16x8xf32>
    %109 = arith.mulf %107, %108 : vector<16x8xf32>
    %110 = arith.truncf %109 : vector<16x8xf32> to vector<16x8xbf16>
    %111 = vector.extract_strided_slice %34 {offsets = [0, 24], sizes = [16, 8], strides = [1, 1]} : vector<16x32xf32> to vector<16x8xf32>
    %112 = arith.truncf %111 : vector<16x8xf32> to vector<16x8xbf16>
    %113 = vector.extract_strided_slice %39 {offsets = [0, 24], sizes = [16, 8], strides = [1, 1]} : vector<16x32xf32> to vector<16x8xf32>
    %114 = arith.truncf %113 : vector<16x8xf32> to vector<16x8xbf16>
    %cst_42 = arith.constant dense<0.000000e+00> : vector<16x16xf32>
    %115 = tpu.matmul %110, %112, %cst_42 {dimension_numbers = #tpu.dot_dimension_numbers<[1], [1], [0], [0], [0, 0, 1, 0], [], []>} : vector<16x8xbf16>, vector<16x8xbf16>, vector<16x16xf32> -> vector<16x16xf32>
    %116 = arith.addf %115, %40 : vector<16x16xf32>
    %cst_43 = arith.constant dense<0xFF800000> : vector<16xf32>
    %117 = vector.multi_reduction <maximumf>, %116, %cst_43 [1] : vector<16x16xf32> to vector<16xf32>
    %118 = vector.shape_cast %117 : vector<16xf32> to vector<16x1xf32>
    %119 = vector.broadcast %118 : vector<16x1xf32> to vector<16x16xf32>
    %120 = arith.subf %116, %119 : vector<16x16xf32>
    %121 = math.exp %120 : vector<16x16xf32>
    %cst_44 = arith.constant dense<0.000000e+00> : vector<16xf32>
    %122 = vector.multi_reduction <add>, %121, %cst_44 [1] : vector<16x16xf32> to vector<16xf32>
    %123 = vector.shape_cast %122 : vector<16xf32> to vector<16x1xf32>
    %124 = tpu.reciprocal %123 {approx = true} : vector<16x1xf32> -> vector<16x1xf32>
    %125 = vector.broadcast %124 : vector<16x1xf32> to vector<16x16xf32>
    %126 = arith.mulf %121, %125 : vector<16x16xf32>
    %127 = arith.truncf %126 : vector<16x16xf32> to vector<16x16xbf16>
    %cst_45 = arith.constant dense<0.000000e+00> : vector<16x8xf32>
    %128 = tpu.matmul %127, %114, %cst_45 {dimension_numbers = #tpu.dot_dimension_numbers<[1], [0], [0], [1], [0, 0, 1, 1], [], []>} : vector<16x16xbf16>, vector<16x8xbf16>, vector<16x8xf32> -> vector<16x8xf32>
    %129 = tpu.concatenate %62, %84, %106, %128 in 1 : vector<16x8xf32>, vector<16x8xf32>, vector<16x8xf32>, vector<16x8xf32> -> vector<16x32xf32>
    %130 = arith.truncf %129 : vector<16x32xf32> to vector<16x32xbf16>
    %c0_46 = arith.constant 0 : index
    %c0_47 = arith.constant 0 : index
    %131 = vector.load %arg11[%c0_46, %c0_47] : memref<32x32xbf16, #tpu.memory_space<vmem>>, vector<32x32xbf16>
    %cst_48 = arith.constant dense<0.000000e+00> : vector<16x32xf32>
    %132 = tpu.matmul %130, %131, %cst_48 {dimension_numbers = #tpu.dot_dimension_numbers<[1], [0], [0], [1], [0, 0, 1, 1], [], []>} : vector<16x32xbf16>, vector<32x32xbf16>, vector<16x32xf32> -> vector<16x32xf32>
    %c0_49 = arith.constant 0 : index
    %c0_50 = arith.constant 0 : index
    %133 = vector.load %arg12[%c0_49, %c0_50] : memref<1x32xf32, #tpu.memory_space<vmem>>, vector<1x32xf32>
    %134 = vector.broadcast %133 : vector<1x32xf32> to vector<16x32xf32>
    %135 = arith.addf %132, %134 : vector<16x32xf32>
    %136 = arith.addf %135, %0 : vector<16x32xf32>
    %c0_51 = arith.constant 0 : index
    %c0_52 = arith.constant 0 : index
    %137 = vector.load %arg13[%c0_51, %c0_52] : memref<1x32xf32, #tpu.memory_space<vmem>>, vector<1x32xf32>
    %c0_53 = arith.constant 0 : index
    %c0_54 = arith.constant 0 : index
    %138 = vector.load %arg14[%c0_53, %c0_54] : memref<1x32xf32, #tpu.memory_space<vmem>>, vector<1x32xf32>
    %cst_55 = arith.constant dense<0.000000e+00> : vector<16xf32>
    %139 = vector.multi_reduction <add>, %136, %cst_55 [1] : vector<16x32xf32> to vector<16xf32>
    %140 = vector.shape_cast %139 : vector<16xf32> to vector<16x1xf32>
    %cst_56 = arith.constant 3.200000e+01 : f32
    %141 = vector.broadcast %cst_56 : f32 to vector<16x1xf32>
    %142 = arith.divf %140, %141 : vector<16x1xf32>
    %143 = vector.broadcast %142 : vector<16x1xf32> to vector<16x32xf32>
    %144 = arith.subf %136, %143 : vector<16x32xf32>
    %145 = arith.mulf %144, %144 : vector<16x32xf32>
    %cst_57 = arith.constant dense<0.000000e+00> : vector<16xf32>
    %146 = vector.multi_reduction <add>, %145, %cst_57 [1] : vector<16x32xf32> to vector<16xf32>
    %147 = vector.shape_cast %146 : vector<16xf32> to vector<16x1xf32>
    %cst_58 = arith.constant 3.200000e+01 : f32
    %148 = vector.broadcast %cst_58 : f32 to vector<16x1xf32>
    %149 = arith.divf %147, %148 : vector<16x1xf32>
    %cst_59 = arith.constant 9.99999974E-6 : f32
    %150 = vector.broadcast %cst_59 : f32 to vector<16x1xf32>
    %151 = arith.addf %149, %150 : vector<16x1xf32>
    %152 = math.rsqrt %151 : vector<16x1xf32>
    %153 = vector.broadcast %152 : vector<16x1xf32> to vector<16x32xf32>
    %154 = arith.mulf %144, %153 : vector<16x32xf32>
    %155 = vector.broadcast %137 : vector<1x32xf32> to vector<16x32xf32>
    %156 = arith.mulf %154, %155 : vector<16x32xf32>
    %157 = vector.broadcast %138 : vector<1x32xf32> to vector<16x32xf32>
    %158 = arith.addf %156, %157 : vector<16x32xf32>
    %159 = arith.truncf %158 : vector<16x32xf32> to vector<16x32xbf16>
    %c0_60 = arith.constant 0 : index
    %c0_61 = arith.constant 0 : index
    %160 = vector.load %arg15[%c0_60, %c0_61] : memref<32x32xbf16, #tpu.memory_space<vmem>>, vector<32x32xbf16>
    %cst_62 = arith.constant dense<0.000000e+00> : vector<16x32xf32>
    %161 = tpu.matmul %159, %160, %cst_62 {dimension_numbers = #tpu.dot_dimension_numbers<[1], [0], [0], [1], [0, 0, 1, 1], [], []>} : vector<16x32xbf16>, vector<32x32xbf16>, vector<16x32xf32> -> vector<16x32xf32>
    %c0_63 = arith.constant 0 : index
    %c0_64 = arith.constant 0 : index
    %162 = vector.load %arg16[%c0_63, %c0_64] : memref<1x32xf32, #tpu.memory_space<vmem>>, vector<1x32xf32>
    %163 = vector.broadcast %162 : vector<1x32xf32> to vector<16x32xf32>
    %164 = arith.addf %161, %163 : vector<16x32xf32>
    %c0_65 = arith.constant 0 : index
    %c0_66 = arith.constant 0 : index
    %165 = vector.load %arg17[%c0_65, %c0_66] : memref<32x32xbf16, #tpu.memory_space<vmem>>, vector<32x32xbf16>
    %cst_67 = arith.constant dense<0.000000e+00> : vector<16x32xf32>
    %166 = tpu.matmul %159, %165, %cst_67 {dimension_numbers = #tpu.dot_dimension_numbers<[1], [0], [0], [1], [0, 0, 1, 1], [], []>} : vector<16x32xbf16>, vector<32x32xbf16>, vector<16x32xf32> -> vector<16x32xf32>
    %c0_68 = arith.constant 0 : index
    %c0_69 = arith.constant 0 : index
    %167 = vector.load %arg18[%c0_68, %c0_69] : memref<1x32xf32, #tpu.memory_space<vmem>>, vector<1x32xf32>
    %168 = vector.broadcast %167 : vector<1x32xf32> to vector<16x32xf32>
    %169 = arith.addf %166, %168 : vector<16x32xf32>
    %cst_70 = arith.constant 0.000000e+00 : f32
    %170 = vector.broadcast %cst_70 : f32 to vector<16x32xf32>
    %171 = arith.subf %170, %169 : vector<16x32xf32>
    %172 = math.exp %171 : vector<16x32xf32>
    %cst_71 = arith.constant 1.000000e+00 : f32
    %173 = vector.broadcast %cst_71 : f32 to vector<16x32xf32>
    %174 = arith.addf %173, %172 : vector<16x32xf32>
    %175 = tpu.reciprocal %174 {approx = true} : vector<16x32xf32> -> vector<16x32xf32>
    %176 = arith.mulf %164, %169 : vector<16x32xf32>
    %177 = arith.mulf %176, %175 : vector<16x32xf32>
    %178 = arith.truncf %177 : vector<16x32xf32> to vector<16x32xbf16>
    %c0_72 = arith.constant 0 : index
    %c0_73 = arith.constant 0 : index
    %179 = vector.load %arg19[%c0_72, %c0_73] : memref<32x32xbf16, #tpu.memory_space<vmem>>, vector<32x32xbf16>
    %cst_74 = arith.constant dense<0.000000e+00> : vector<16x32xf32>
    %180 = tpu.matmul %178, %179, %cst_74 {dimension_numbers = #tpu.dot_dimension_numbers<[1], [0], [0], [1], [0, 0, 1, 1], [], []>} : vector<16x32xbf16>, vector<32x32xbf16>, vector<16x32xf32> -> vector<16x32xf32>
    %c0_75 = arith.constant 0 : index
    %c0_76 = arith.constant 0 : index
    %181 = vector.load %arg20[%c0_75, %c0_76] : memref<1x32xf32, #tpu.memory_space<vmem>>, vector<1x32xf32>
    %182 = vector.broadcast %181 : vector<1x32xf32> to vector<16x32xf32>
    %183 = arith.addf %180, %182 : vector<16x32xf32>
    %184 = arith.addf %183, %136 : vector<16x32xf32>
    %c0_77 = arith.constant 0 : index
    %c0_78 = arith.constant 0 : index
    %185 = vector.load %arg21[%c0_77, %c0_78] : memref<16x32xf32, #tpu.memory_space<vmem>>, vector<16x32xf32>
    tpu.vector_store %arg21[%c0_77, %c0_78], %184 {strides = array<i32>} : memref<16x32xf32, #tpu.memory_space<vmem>>, vector<16x32xf32>,
    return
  }
  func.func @transform_0(%arg0: i32) -> (i32, i32) {
    %c0_i32 = arith.constant 0 : i32
    %c0_i32_0 = arith.constant 0 : i32
    return %arg0, %c0_i32 : i32, i32
  }
  func.func @transform_1(%arg0: i32) -> (i32, i32) {
    %c0_i32 = arith.constant 0 : i32
    %c0_i32_0 = arith.constant 0 : i32
    %c0_i32_1 = arith.constant 0 : i32
    return %c0_i32, %c0_i32_0 : i32, i32
  }
  func.func @transform_2(%arg0: i32) -> (i32, i32) {
    %c0_i32 = arith.constant 0 : i32
    %c0_i32_0 = arith.constant 0 : i32
    %c0_i32_1 = arith.constant 0 : i32
    return %c0_i32, %c0_i32_0 : i32, i32
  }
  func.func @transform_3(%arg0: i32) -> (i32, i32) {
    %c0_i32 = arith.constant 0 : i32
    %c0_i32_0 = arith.constant 0 : i32
    %c0_i32_1 = arith.constant 0 : i32
    return %c0_i32, %c0_i32_0 : i32, i32
  }
  func.func @transform_4(%arg0: i32) -> (i32, i32) {
    %c0_i32 = arith.constant 0 : i32
    %c0_i32_0 = arith.constant 0 : i32
    %c0_i32_1 = arith.constant 0 : i32
    return %c0_i32, %c0_i32_0 : i32, i32
  }
  func.func @transform_5(%arg0: i32) -> (i32, i32) {
    %c0_i32 = arith.constant 0 : i32
    %c0_i32_0 = arith.constant 0 : i32
    %c0_i32_1 = arith.constant 0 : i32
    return %c0_i32, %c0_i32_0 : i32, i32
  }
  func.func @transform_6(%arg0: i32) -> (i32, i32) {
    %c0_i32 = arith.constant 0 : i32
    %c0_i32_0 = arith.constant 0 : i32
    %c0_i32_1 = arith.constant 0 : i32
    return %c0_i32, %c0_i32_0 : i32, i32
  }
  func.func @transform_7(%arg0: i32) -> (i32, i32) {
    %c0_i32 = arith.constant 0 : i32
    %c0_i32_0 = arith.constant 0 : i32
    %c0_i32_1 = arith.constant 0 : i32
    return %c0_i32, %c0_i32_0 : i32, i32
  }
  func.func @transform_8(%arg0: i32) -> (i32, i32) {
    %c0_i32 = arith.constant 0 : i32
    %c0_i32_0 = arith.constant 0 : i32
    %c0_i32_1 = arith.constant 0 : i32
    return %c0_i32, %c0_i32_0 : i32, i32
  }
  func.func @transform_9(%arg0: i32) -> (i32, i32) {
    %c0_i32 = arith.constant 0 : i32
    %c0_i32_0 = arith.constant 0 : i32
    %c0_i32_1 = arith.constant 0 : i32
    return %c0_i32, %c0_i32_0 : i32, i32
  }
  func.func @transform_10(%arg0: i32) -> (i32, i32) {
    %c0_i32 = arith.constant 0 : i32
    %c0_i32_0 = arith.constant 0 : i32
    %c0_i32_1 = arith.constant 0 : i32
    return %c0_i32, %c0_i32_0 : i32, i32
  }
  func.func @transform_11(%arg0: i32) -> (i32, i32) {
    %c0_i32 = arith.constant 0 : i32
    %c0_i32_0 = arith.constant 0 : i32
    %c0_i32_1 = arith.constant 0 : i32
    return %c0_i32, %c0_i32_0 : i32, i32
  }
  func.func @transform_12(%arg0: i32) -> (i32, i32) {
    %c0_i32 = arith.constant 0 : i32
    %c0_i32_0 = arith.constant 0 : i32
    %c0_i32_1 = arith.constant 0 : i32
    return %c0_i32, %c0_i32_0 : i32, i32
  }
  func.func @transform_13(%arg0: i32) -> (i32, i32) {
    %c0_i32 = arith.constant 0 : i32
    %c0_i32_0 = arith.constant 0 : i32
    %c0_i32_1 = arith.constant 0 : i32
    return %c0_i32, %c0_i32_0 : i32, i32
  }
  func.func @transform_14(%arg0: i32) -> (i32, i32) {
    %c0_i32 = arith.constant 0 : i32
    %c0_i32_0 = arith.constant 0 : i32
    %c0_i32_1 = arith.constant 0 : i32
    return %c0_i32, %c0_i32_0 : i32, i32
  }
  func.func @transform_15(%arg0: i32) -> (i32, i32) {
    %c0_i32 = arith.constant 0 : i32
    %c0_i32_0 = arith.constant 0 : i32
    %c0_i32_1 = arith.constant 0 : i32
    return %c0_i32, %c0_i32_0 : i32, i32
  }
  func.func @transform_16(%arg0: i32) -> (i32, i32) {
    %c0_i32 = arith.constant 0 : i32
    %c0_i32_0 = arith.constant 0 : i32
    %c0_i32_1 = arith.constant 0 : i32
    return %c0_i32, %c0_i32_0 : i32, i32
  }
  func.func @transform_17(%arg0: i32) -> (i32, i32) {
    %c0_i32 = arith.constant 0 : i32
    %c0_i32_0 = arith.constant 0 : i32
    %c0_i32_1 = arith.constant 0 : i32
    return %c0_i32, %c0_i32_0 : i32, i32
  }
  func.func @transform_18(%arg0: i32) -> (i32, i32) {
    %c0_i32 = arith.constant 0 : i32
    %c0_i32_0 = arith.constant 0 : i32
    %c0_i32_1 = arith.constant 0 : i32
    return %c0_i32, %c0_i32_0 : i32, i32
  }
  func.func @transform_19(%arg0: i32) -> (i32, i32) {
    %c0_i32 = arith.constant 0 : i32
    %c0_i32_0 = arith.constant 0 : i32
    %c0_i32_1 = arith.constant 0 : i32
    return %c0_i32, %c0_i32_0 : i32, i32
  }
  func.func @transform_20(%arg0: i32) -> (i32, i32) {
    %c0_i32 = arith.constant 0 : i32
    %c0_i32_0 = arith.constant 0 : i32
    return %arg0, %c0_i32 : i32, i32
  }
}

</mosaic_0001>

<bundles_post_ra>
// kernel: tpu_custom_call.1
= control target key start
LH: loop header
LB: loop body
LE: loop exit
PB: predicated region body
PF: predicated region fallthrough
CT: control target
= control target key end

     0   :  { %s3916_s0 = inlined_call_operand.hbm [shape: f32[32,32], index: 0, kind: input, shape index: {}]   ;;  %s3917_s1 = inlined_call_operand.hbm [shape: f32[16,16], index: 1, kind: input, shape index: {}]   ;;  %s3918_s2 = inlined_call_operand.hbm [shape: f32[1,32], index: 2, kind: input, shape index: {}]   ;;  %s3919_s3 = inlined_call_operand.hbm [shape: f32[1,32], index: 3, kind: input, shape index: {}]   ;;  %s3920_s4 = inlined_call_operand.hbm [shape: bf16[32,32], index: 4, kind: input, shape index: {}]   ;;  %s3921_s5 = inlined_call_operand.hbm [shape: f32[1,32], index: 5, kind: input, shape index: {}]   ;;  %s3922_s6 = inlined_call_operand.hbm [shape: bf16[32,32], index: 6, kind: input, shape index: {}]   ;;  %s3923_s7 = inlined_call_operand.hbm [shape: f32[1,32], index: 7, kind: input, shape index: {}]   ;;  %s3924_s8 = inlined_call_operand.hbm [shape: bf16[32,32], index: 8, kind: input, shape index: {}]   ;;  %s3925_s9 = inlined_call_operand.hbm [shape: f32[1,32], index: 9, kind: input, shape index: {}]   ;;  %s3926_s10 = inlined_call_operand.vmem [shape: bf16[32,32], index: 10, kind: input, shape index: {}]   ;;  %s3927_s11 = inlined_call_operand.hbm [shape: f32[1,32], index: 11, kind: input, shape index: {}]   ;;  %s3928_s12 = inlined_call_operand.hbm [shape: f32[1,32], index: 12, kind: input, shape index: {}]   ;;  %s3929_s13 = inlined_call_operand.hbm [shape: f32[1,32], index: 13, kind: input, shape index: {}]   ;;  %s3930_s14 = inlined_call_operand.hbm [shape: bf16[32,32], index: 14, kind: input, shape index: {}]   ;;  %s3931_s15 = inlined_call_operand.hbm [shape: f32[1,32], index: 15, kind: input, shape index: {}]   ;;  %s3932_s16 = inlined_call_operand.hbm [shape: bf16[32,32], index: 16, kind: input, shape index: {}]   ;;  %s3933_s17 = inlined_call_operand.hbm [shape: f32[1,32], index: 17, kind: input, shape index: {}]   ;;  %s3934_s18 = inlined_call_operand.vmem [shape: bf16[32,32], index: 18, kind: input, shape index: {}]   ;;  %s3935_s19 = inlined_call_operand.vmem [shape: f32[1,32], index: 19, kind: input, shape index: {}]   ;;  %s3936_s20 = inlined_call_operand.hbm [shape: f32[32,32], index: 20, kind: output, shape index: {}]  }
   0x1   :  { %3953 = sst [smem:[#allocation42_spill]] %s3916_s0 }
   0x2   :  { %3954 = sst [smem:[#allocation43_spill]] %s3917_s1 }
   0x3   :  { %3955 = sst [smem:[#allocation44_spill]] %s3918_s2 }
   0x4   :  { %3956 = sst [smem:[#allocation45_spill]] %s3919_s3 }
   0x5   :  { %3957 = sst [smem:[#allocation46_spill]] %s3920_s4 }
   0x6   :  { %3958 = sst [smem:[#allocation47_spill]] %s3921_s5 }
   0x7   :  { %3959 = sst [smem:[#allocation48_spill]] %s3922_s6 }
   0x8   :  { %3960 = sst [smem:[#allocation49_spill]] %s3923_s7 }
   0x9   :  { %3961 = sst [smem:[#allocation50_spill]] %s3924_s8 }
   0xa   :  { %3962 = sst [smem:[#allocation51_spill]] %s3926_s10 }
   0xb   :  { %3963 = sst [smem:[#allocation52_spill]] %s3934_s18 }
   0xc   :  { %3964 = sst [smem:[#allocation53_spill]] %s3935_s19 }
   0xd   :  { %3965 = sst [smem:[#allocation54_spill]] %s3936_s20 }
   0xe   :  { %25 = vsyncpa [#allocation3], 0 }
   0xf   :  { %27 = vsyncpa [#allocation3 + $0x1], 0 }
  0x10   :  { %28 = vsyncpa [#allocation6], 0 }
  0x11   :  { %29 = vsyncpa [#allocation9], 0 }
  0x12   :  { %30 = vsyncpa [#allocation12], 0 }
  0x13   :  { %31 = vsyncpa [#allocation15], 0 }
  0x14   :  { %32 = vsyncpa [#allocation18], 0 }
  0x15   :  { %33 = vsyncpa [#allocation21], 0 }
  0x16   :  { %34 = vsyncpa [#allocation24], 0 }
  0x17   :  { %35 = vsyncpa [#allocation27], 0 }
  0x18   :  { %36 = vsyncpa [#allocation4], 0 }
  0x19   :  { %38 = vsyncpa [#allocation4 + $0x1], 0  ;;  %s3406_s1 = smov 0   ;;  %s3408_s22 = smov 0  }
  0x1a   :  { %s3410_s23 = smov 0   ;;  %s3412_s24 = smov 0  }
  0x1b LB: > { %s3270_s2 = smov [#allocation5]   ;;  %s3427_s3 = sadd.s32 4294967295, %s3268_s24   ;;  %s3268_s24 = sphi %s3412_s24, %s4021_s24   ;;  %s3264_s23 = sphi %s3410_s23, %s4020_s23   ;;  %s3260_s22 = sphi %s3408_s22, %s4019_s22   ;;  %s3256_s1 = sphi %s3406_s1, %s4018_s1  }
  0x1c   : > { %s512_s25 = sshll.u32 %s3270_s2, 4  ;;  %3966 = sst [smem:[#allocation40_spill]] %s3427_s3  ;;  %s513_s25 = int_to_ptr.vmem [resolvable:$true] %s512_s25 }
  0x1d   : > { %p2203_p0 = scmp.ge.s32.totalorder %s3268_s24, 1  ;;  %p3945_p1 = scmp.eq.s32.totalorder %s3427_s3, 0 }
  0x1e   : > { %p500_p2 = scmp.lt.s32.totalorder %s3268_s24, 3  ;;  %s3271_s27 = smov [#allocation8]  }
  0x1f   : > { %s537_s28 = sshll.u32 %s3271_s27, 4  ;;  %s3272_s29 = smov [#allocation11]   ;;  %s538_s28 = int_to_ptr.vmem [resolvable:$true] %s537_s28 }
  0x20   : > { %p3432_p3 = pnand %p2203_p0, %p500_p2  ;;  %s561_s30 = sshll.u32 %s3272_s29, 4  ;;  %s3445_s30 = int_to_ptr.vmem [resolvable:$true] %s561_s30 }
  0x21   : > { %s2739_s21 = scalar_lea.vmem %s513_s25, 256  ;;  %p2747_p11 = scmp.lt.s32.totalorder %s513_s25, %s513_s25 }
  0x22   : > { %s3967_s26 = scalar_select %p3432_p3, 1, 0 }
  0x23   : > { %p2499_p5 = pneg %p3432_p3  ;;  %p2740_p8 = scmp.ne.s32.totalorder %s513_s25, %s2739_s21 }
  0x24   : > { %3968 = sst [smem:[#allocation41_spill]] %s3967_s26  ;;  %p2748_p12 = scmp.lt.s32.totalorder %s2739_s21, %s2739_s21 }
  0x25   : > { %p3441_p6 = pnand %p2499_p5, %p3945_p1 }
  0x26   : > { %p2749_p13 = por %p2748_p12, %p2747_p11 }
  0x27   : > { %p3449_p7 = pneg %p3441_p6 }
  0x29   : > { %p2742_p9 = pnand %p2740_p8, %p3449_p7 }
  0x2b   : > { %p2743_p10 = pneg %p2742_p9 }
  0x2d   : > { %p2750_p0 = pnand %p2749_p13, %p2743_p10 }
  0x2f   : > { %2753 = shalt.err (!%p2750_p0)
}
  0x30   : > { %s3947_s2 = smov 128   ;;  %s3948_s27 = smov 8  }
  0x31   : > { %s3971_s19 = sld [smem:[#allocation43_spill]]  ;;  %s2765_s18 = scalar_lea.vmem %s538_s28, 16 }
  0x32   : > { %p2766_p2 = scmp.ne.s32.totalorder %s538_s28, %s2765_s18  ;;  %s2772_s21 = scalar_lea.vmem %s538_s28, 32 }
  0x33   : > { %p2773_p9 = scmp.lt.s32.totalorder %s538_s28, %s538_s28  ;;  %p2774_p10 = scmp.lt.s32.totalorder %s2772_s21, %s2765_s18 }
  0x34   : > { %p2768_p5 = pnand %p2766_p2, %p3449_p7 }
  0x35   : > { %p2775_p11 = por %p2774_p10, %p2773_p9 }
  0x36   : > { %p2769_p8 = pneg %p2768_p5 }
  0x37   : > { %2502 = dma.hbm_to_vmem [thread:$0]  (!%p3441_p6), %s3971_s19, 256, %s513_s25, [#allocation6], %s3947_s2, %s3947_s2, %s3948_s27  }
  0x38   : > { %p2776_p12 = pnand %p2775_p11, %p2769_p8 }
  0x3a   : > { %2779 = shalt.err (!%p2776_p12)
}
  0x3b   : > { %s3972_s3 = sld [smem:[#allocation45_spill]]  ;;  %s2791_s19 = scalar_lea.vmem %s3445_s30, 16 }
  0x3c   : > { %p2792_p13 = scmp.ne.s32.totalorder %s3445_s30, %s2791_s19  ;;  %s2798_s18 = scalar_lea.vmem %s3445_s30, 32 }
  0x3d   : > { %p2799_p5 = scmp.lt.s32.totalorder %s3445_s30, %s3445_s30  ;;  %p2800_p8 = scmp.lt.s32.totalorder %s2798_s18, %s2791_s19 }
  0x3e   : > { %p2794_p0 = pnand %p2792_p13, %p3449_p7 }
  0x3f   : > { %p2801_p9 = por %p2800_p8, %p2799_p5 }
  0x40   : > { %p2795_p2 = pneg %p2794_p0 }
  0x41   : > { %2508 = dma.hbm_to_vmem [thread:$0]  (!%p3441_p6), %s3972_s3, 16, %s538_s28, [#allocation9]  }
  0x42   : > { %p2802_p10 = pnand %p2801_p9, %p2795_p2 }
  0x44   : > { %2805 = shalt.err (!%p2802_p10)
}
  0x45   : > { %s3973_s5 = sld [smem:[#allocation47_spill]]  ;;  %s3275_s25 = smov [#allocation14]  }
  0x46   : > { %s585_s3 = sshll.u32 %s3275_s25, 4  ;;  %s3276_s26 = smov [#allocation17]   ;;  %s586_s3 = int_to_ptr.vmem [resolvable:$true] %s585_s3 }
  0x47   : > { %s609_s28 = sshll.u32 %s3276_s26, 4  ;;  %s2817_s29 = scalar_lea.vmem %s586_s3, 16  ;;  %s610_s28 = int_to_ptr.vmem [resolvable:$true] %s609_s28 }
  0x48   : > { %p2818_p11 = scmp.ne.s32.totalorder %s586_s3, %s2817_s29  ;;  %s2824_s21 = scalar_lea.vmem %s586_s3, 32 }
  0x49   : > { %p2825_p0 = scmp.lt.s32.totalorder %s586_s3, %s586_s3  ;;  %p2826_p2 = scmp.lt.s32.totalorder %s2824_s21, %s2817_s29 }
  0x4a   : > { %p2820_p12 = pnand %p2818_p11, %p3449_p7 }
  0x4b   : > { %2514 = dma.hbm_to_vmem [thread:$0]  (!%p3441_p6), %s3973_s5, 16, %s3445_s30, [#allocation12]  }
  0x4c   : > { %p2821_p13 = pneg %p2820_p12  ;;  %p2827_p5 = por %p2826_p2, %p2825_p0 }
  0x4e   : > { %p2828_p8 = pnand %p2827_p5, %p2821_p13 }
  0x50   : > { %2831 = shalt.err (!%p2828_p8)
}
  0x51   : > { %s3974_s7 = sld [smem:[#allocation49_spill]]  ;;  %s2843_s18 = scalar_lea.vmem %s610_s28, 16 }
  0x52   : > { %p2844_p9 = scmp.ne.s32.totalorder %s610_s28, %s2843_s18  ;;  %s2850_s10 = scalar_lea.vmem %s610_s28, 32 }
  0x53   : > { %p2851_p12 = scmp.lt.s32.totalorder %s610_s28, %s610_s28  ;;  %p2852_p4 = scmp.lt.s32.totalorder %s2850_s10, %s2843_s18 }
  0x54   : > { %p2846_p10 = pnand %p2844_p9, %p3449_p7 }
  0x55   : > { %p2853_p1 = por %p2852_p4, %p2851_p12 }
  0x56   : > { %p2847_p11 = pneg %p2846_p10 }
  0x57   : > { %2520 = dma.hbm_to_vmem [thread:$0]  (!%p3441_p6), %s3974_s7, 16, %s586_s3, [#allocation15]  }
  0x58   : > { %p2854_p0 = pnand %p2853_p1, %p2847_p11 }
  0x5a   : > { %2857 = shalt.err (!%p2854_p0)
}
  0x5b   : > { %2526 = dma.hbm_to_vmem [thread:$0]  (!%p3441_p6), %s3925_s9, 16, %s610_s28, [#allocation18]  }
  0x5c   : > { %s3277_s3 = smov [#allocation20]  }
  0x5d   : > { %s634_s26 = sshll.u32 %s3277_s3, 4  ;;  %s635_s26 = int_to_ptr.vmem [resolvable:$true] %s634_s26 }
  0x5e   : > { %s2869_s29 = scalar_lea.vmem %s635_s26, 16  ;;  %s2876_s21 = scalar_lea.vmem %s635_s26, 32 }
  0x5f   : > { %p2870_p13 = scmp.ne.s32.totalorder %s635_s26, %s2869_s29  ;;  %p2877_p8 = scmp.lt.s32.totalorder %s635_s26, %s635_s26 }
  0x60   : > { %p2878_p4 = scmp.lt.s32.totalorder %s2876_s21, %s2869_s29 }
  0x61   : > { %p2872_p2 = pnand %p2870_p13, %p3449_p7 }
  0x62   : > { %p2879_p1 = por %p2878_p4, %p2877_p8 }
  0x63   : > { %p2873_p5 = pneg %p2872_p2 }
  0x65   : > { %p2880_p9 = pnand %p2879_p1, %p2873_p5 }
  0x67   : > { %2883 = shalt.err (!%p2880_p9)
}
  0x68   : > { %2532 = dma.hbm_to_vmem [thread:$0]  (!%p3441_p6), %s3928_s12, 16, %s635_s26, [#allocation21]  }
  0x69   : > { %s3278_s28 = smov [#allocation23]   ;;  %s3279_s10 = smov [#allocation26]  }
  0x6a   : > { %s655_s18 = sshll.u32 %s3278_s28, 4  ;;  %s679_s20 = sshll.u32 %s3279_s10, 4  ;;  %s656_s18 = int_to_ptr.vmem [resolvable:$true] %s655_s18  ;;  %s680_s20 = int_to_ptr.vmem [resolvable:$true] %s679_s20 }
  0x6b   : > { %s2895_s25 = scalar_lea.vmem %s656_s18, 256  ;;  %p2903_p0 = scmp.lt.s32.totalorder %s656_s18, %s656_s18 }
  0x6c   : > { %p2896_p10 = scmp.ne.s32.totalorder %s656_s18, %s2895_s25  ;;  %p2904_p13 = scmp.lt.s32.totalorder %s2895_s25, %s2895_s25 }
  0x6e   : > { %p2898_p11 = pnand %p2896_p10, %p3449_p7  ;;  %p2905_p2 = por %p2904_p13, %p2903_p0 }
  0x70   : > { %p2899_p12 = pneg %p2898_p11 }
  0x72   : > { %p2906_p5 = pnand %p2905_p2, %p2899_p12 }
  0x74   : > { %2909 = shalt.err (!%p2906_p5)
}
  0x75   : > { %s3280_s3 = smov 64   ;;  %s3281_s26 = smov 4  }
  0x76   : > { %2538 = dma.hbm_to_vmem [thread:$0]  (!%p3441_p6), %s3930_s14, 256, %s656_s18, [#allocation24], %s3280_s3, %s3280_s3, %s3281_s26  }
  0x77   : > { %s2921_s19 = scalar_lea.vmem %s680_s20, 256  ;;  %p2929_p9 = scmp.lt.s32.totalorder %s680_s20, %s680_s20 }
  0x78   : > { %p2922_p8 = scmp.ne.s32.totalorder %s680_s20, %s2921_s19  ;;  %p2930_p10 = scmp.lt.s32.totalorder %s2921_s19, %s2921_s19 }
  0x7a   : > { %p2924_p4 = pnand %p2922_p8, %p3449_p7  ;;  %p2931_p11 = por %p2930_p10, %p2929_p9 }
  0x7c   : > { %p2925_p1 = pneg %p2924_p4 }
  0x7e   : > { %p2932_p12 = pnand %p2931_p11, %p2925_p1 }
  0x80   : > { %2935 = shalt.err (!%p2932_p12)
}
  0x81   : > { %2544 = dma.hbm_to_vmem [thread:$0]  (!%p3441_p6), %s3932_s16, 256, %s680_s20, [#allocation27], %s3280_s3, %s3280_s3, %s3281_s26  }
  0x82   : > { %s3282_s18 = smov [#allocation7]   ;;  %s3283_s25 = smov [#allocation10]  }
  0x83   : > { %s526_s10 = sshll.u32 %s3282_s18, 4  ;;  %s547_s29 = sshll.u32 %s3283_s25, 4  ;;  %s527_s10 = int_to_ptr.vmem [resolvable:$true] %s526_s10  ;;  %s548_s29 = int_to_ptr.vmem [resolvable:$true] %s547_s29 }
  0x84   : > { %s2947_s21 = scalar_lea.vmem %s527_s10, 16  ;;  %s2954_s19 = scalar_lea.vmem %s527_s10, 32 }
  0x85   : > { %p2948_p0 = scmp.ne.s32.totalorder %s527_s10, %s2947_s21  ;;  %p2955_p5 = scmp.lt.s32.totalorder %s527_s10, %s527_s10 }
  0x86   : > { %p2956_p8 = scmp.lt.s32.totalorder %s2954_s19, %s2947_s21 }
  0x87   : > { %p2950_p13 = pnand %p2948_p0, %p3449_p7 }
  0x88   : > { %p2957_p4 = por %p2956_p8, %p2955_p5 }
  0x89   : > { %p2951_p2 = pneg %p2950_p13 }
  0x8b   : > { %p2958_p1 = pnand %p2957_p4, %p2951_p2 }
  0x8d   : > { %2961 = shalt.err (!%p2958_p1)
}
  0x8e   : > { %s3975_s28 = sld [smem:[#allocation44_spill]]  ;;  %s2973_s18 = scalar_lea.vmem %s548_s29, 256 }
  0x8f   : > { %p2974_p9 = scmp.ne.s32.totalorder %s548_s29, %s2973_s18  ;;  %p2981_p12 = scmp.lt.s32.totalorder %s548_s29, %s548_s29 }
  0x90   : > { %p2982_p0 = scmp.lt.s32.totalorder %s2973_s18, %s2973_s18 }
  0x91   : > { %p2976_p10 = pnand %p2974_p9, %p3449_p7 }
  0x92   : > { %p2983_p13 = por %p2982_p0, %p2981_p12 }
  0x93   : > { %p2977_p11 = pneg %p2976_p10 }
  0x94   : > { %2505 = dma.hbm_to_vmem [thread:$0]  (!%p3441_p6), %s3975_s28, 16, %s527_s10, [#allocation6]  }
  0x95   : > { %p2984_p3 = pnand %p2983_p13, %p2977_p11 }
  0x97   : > { %2987 = shalt.err (!%p2984_p3)
}
  0x98   : > { %s3976_s19 = sld [smem:[#allocation46_spill]]  ;;  %s3284_s10 = smov [#allocation13]  }
  0x99   : > { %s571_s20 = sshll.u32 %s3284_s10, 4  ;;  %s3285_s30 = smov [#allocation16]   ;;  %s572_s20 = int_to_ptr.vmem [resolvable:$true] %s571_s20 }
  0x9a   : > { %s595_s28 = sshll.u32 %s3285_s30, 4  ;;  %s2999_s18 = scalar_lea.vmem %s572_s20, 256  ;;  %s596_s28 = int_to_ptr.vmem [resolvable:$true] %s595_s28 }
  0x9b   : > { %p3000_p2 = scmp.ne.s32.totalorder %s572_s20, %s2999_s18  ;;  %p3007_p8 = scmp.lt.s32.totalorder %s572_s20, %s572_s20 }
  0x9c   : > { %p3008_p4 = scmp.lt.s32.totalorder %s2999_s18, %s2999_s18 }
  0x9d   : > { %p3002_p3 = pnand %p3000_p2, %p3449_p7 }
  0x9e   : > { %2511 = dma.hbm_to_vmem [thread:$0]  (!%p3441_p6), %s3976_s19, 256, %s548_s29, [#allocation9], %s3280_s3, %s3280_s3, %s3281_s26  }
  0x9f   : > { %p3003_p5 = pneg %p3002_p3  ;;  %p3009_p1 = por %p3008_p4, %p3007_p8 }
  0xa1   : > { %p3010_p9 = pnand %p3009_p1, %p3003_p5 }
  0xa3   : > { %3013 = shalt.err (!%p3010_p9)
}
  0xa4   : > { %s3977_s6 = sld [smem:[#allocation48_spill]]  ;;  %s3025_s21 = scalar_lea.vmem %s596_s28, 256 }
  0xa5   : > { %p3026_p10 = scmp.ne.s32.totalorder %s596_s28, %s3025_s21  ;;  %p3033_p0 = scmp.lt.s32.totalorder %s596_s28, %s596_s28 }
  0xa6   : > { %p3034_p13 = scmp.lt.s32.totalorder %s3025_s21, %s3025_s21 }
  0xa7   : > { %p3028_p11 = pnand %p3026_p10, %p3449_p7 }
  0xa8   : > { %p3035_p2 = por %p3034_p13, %p3033_p0 }
  0xa9   : > { %p3029_p12 = pneg %p3028_p11 }
  0xaa   : > { %2517 = dma.hbm_to_vmem [thread:$0]  (!%p3441_p6), %s3977_s6, 256, %s572_s20, [#allocation12], %s3280_s3, %s3280_s3, %s3281_s26  }
  0xab   : > { %p3036_p3 = pnand %p3035_p2, %p3029_p12 }
  0xad   : > { %3039 = shalt.err (!%p3036_p3)
}
  0xae   : > { %s3978_s8 = sld [smem:[#allocation50_spill]]  ;;  %s3286_s20 = smov [#allocation19]  }
  0xaf   : > { %s623_s30 = sshll.u32 %s3286_s20, 4  ;;  %s3287_s18 = smov [#allocation22]   ;;  %s624_s30 = int_to_ptr.vmem [resolvable:$true] %s623_s30 }
  0xb0   : > { %s645_s29 = sshll.u32 %s3287_s18, 4  ;;  %s3051_s25 = scalar_lea.vmem %s624_s30, 16  ;;  %s646_s29 = int_to_ptr.vmem [resolvable:$true] %s645_s29 }
  0xb1   : > { %p3052_p5 = scmp.ne.s32.totalorder %s624_s30, %s3051_s25  ;;  %s3058_s21 = scalar_lea.vmem %s624_s30, 32 }
  0xb2   : > { %p3059_p1 = scmp.lt.s32.totalorder %s624_s30, %s624_s30  ;;  %p3060_p9 = scmp.lt.s32.totalorder %s3058_s21, %s3051_s25 }
  0xb3   : > { %p3054_p8 = pnand %p3052_p5, %p3449_p7 }
  0xb4   : > { %2523 = dma.hbm_to_vmem [thread:$0]  (!%p3441_p6), %s3978_s8, 256, %s596_s28, [#allocation15], %s3280_s3, %s3280_s3, %s3281_s26  }
  0xb5   : > { %p3055_p4 = pneg %p3054_p8  ;;  %p3061_p10 = por %p3060_p9, %p3059_p1 }
  0xb7   : > { %p3062_p11 = pnand %p3061_p10, %p3055_p4 }
  0xb9   : > { %3065 = shalt.err (!%p3062_p11)
}
  0xba   : > { %2529 = dma.hbm_to_vmem [thread:$0]  (!%p3441_p6), %s3927_s11, 16, %s624_s30, [#allocation18]  }
  0xbb   : > { %s3077_s28 = scalar_lea.vmem %s646_s29, 16  ;;  %s3084_s19 = scalar_lea.vmem %s646_s29, 32 }
  0xbc   : > { %p3078_p12 = scmp.ne.s32.totalorder %s646_s29, %s3077_s28  ;;  %p3085_p2 = scmp.lt.s32.totalorder %s646_s29, %s646_s29 }
  0xbd   : > { %p3086_p3 = scmp.lt.s32.totalorder %s3084_s19, %s3077_s28 }
  0xbe   : > { %p3080_p0 = pnand %p3078_p12, %p3449_p7 }
  0xbf   : > { %p3087_p5 = por %p3086_p3, %p3085_p2 }
  0xc0   : > { %p3081_p13 = pneg %p3080_p0 }
  0xc2   : > { %p3088_p8 = pnand %p3087_p5, %p3081_p13 }
  0xc4   : > { %3091 = shalt.err (!%p3088_p8)
}
  0xc5   : > { %2535 = dma.hbm_to_vmem [thread:$0]  (!%p3441_p6), %s3929_s13, 16, %s646_s29, [#allocation21]  }
  0xc6   : > { %s3288_s18 = smov [#allocation25]   ;;  %s3289_s25 = smov [#allocation28]  }
  0xc7   : > { %s669_s30 = sshll.u32 %s3288_s18, 4  ;;  %s693_s21 = sshll.u32 %s3289_s25, 4  ;;  %s670_s30 = int_to_ptr.vmem [resolvable:$true] %s669_s30  ;;  %s694_s21 = int_to_ptr.vmem [resolvable:$true] %s693_s21 }
  0xc8   : > { %s3103_s3 = scalar_lea.vmem %s670_s30, 16  ;;  %s3110_s26 = scalar_lea.vmem %s670_s30, 32 }
  0xc9   : > { %p3104_p4 = scmp.ne.s32.totalorder %s670_s30, %s3103_s3  ;;  %p3111_p10 = scmp.lt.s32.totalorder %s670_s30, %s670_s30 }
  0xca   : > { %p3112_p11 = scmp.lt.s32.totalorder %s3110_s26, %s3103_s3 }
  0xcb   : > { %p3106_p1 = pnand %p3104_p4, %p3449_p7 }
  0xcc   : > { %p3113_p12 = por %p3112_p11, %p3111_p10 }
  0xcd   : > { %p3107_p9 = pneg %p3106_p1 }
  0xcf   : > { %p3114_p0 = pnand %p3113_p12, %p3107_p9 }
  0xd1   : > { %3117 = shalt.err (!%p3114_p0)
}
  0xd2   : > { %2541 = dma.hbm_to_vmem [thread:$0]  (!%p3441_p6), %s3931_s15, 16, %s670_s30, [#allocation24]  }
  0xd3   : > { %s3129_s19 = scalar_lea.vmem %s694_s21, 16  ;;  %s3136_s10 = scalar_lea.vmem %s694_s21, 32 }
  0xd4   : > { %p3130_p13 = scmp.ne.s32.totalorder %s694_s21, %s3129_s19  ;;  %p3137_p5 = scmp.lt.s32.totalorder %s694_s21, %s694_s21 }
  0xd5   : > { %p3138_p8 = scmp.lt.s32.totalorder %s3136_s10, %s3129_s19 }
  0xd6   : > { %p3132_p2 = pnand %p3130_p13, %p3449_p7 }
  0xd7   : > { %p3139_p4 = por %p3138_p8, %p3137_p5 }
  0xd8   : > { %p3133_p3 = pneg %p3132_p2 }
  0xda   : > { %p3140_p1 = pnand %p3139_p4, %p3133_p3 }
  0xdc   : > { %3143 = shalt.err (!%p3140_p1)
}
  0xdd   : > { %s3979_s0 = sld [smem:[#allocation40_spill]]  ;;  %s2202_s30 = sadd.s32 4294967294, %s3268_s24  }
  0xde   : > { %2547 = dma.hbm_to_vmem [thread:$0]  (!%p3441_p6), %s3933_s17, 16, %s694_s21, [#allocation27]  }
  0xdf   : > { %s3591_s4 = sadd.s32 1, %s3268_s24   ;;  %s51_s3 = sadd.s32 1, %s3264_s23 }
  0xe0   : > { %s48_s25 = ssub.s32 %s3268_s24, %s3591_s4  ;;  %p58_p9 = scmp.ne.s32.totalorder %s3264_s23, %s3260_s22 }
  0xe1   : > { %p49_p7 = scmp.eq.s32.totalorder %s48_s25, 0  ;;  %p59_p10 = scmp.eq.s32.totalorder %s3268_s24, 0 }
  0xe2   : > { %p64_p11 = scmp.ne.s32.totalorder %s3260_s22, %s3256_s1  ;;  %p493_p2 = scmp.eq.s32.totalorder %s2202_s30, 1 }
  0xe3   : > { %s3602_s26 = scalar_select %p49_p7, %s3264_s23, %s51_s3  }
  0xe4   : > { %p3604_p12 = por %p59_p10, %p58_p9  ;;  %p3981_p0 = scmp.eq.s32.totalorder %s3979_s0, 0 }
  0xe5   : > { %p487_p13 = scmp.eq.s32.totalorder %s3979_s0, 1  ;;  %p2572_p3 = scmp.lt.s32.totalorder %s3268_s24, 2 }
  0xe6   : > { %p3610_p6 = por %p3981_p0, %p64_p11  ;;  %s710_s28 = sand.u32 1, %s3264_s23  }
  0xe7   : > { %p3617_p5 = por %p487_p13, %p58_p9  ;;  %p3621_p8 = por %p493_p2, %p64_p11 }
  0xe8   : > { %s3982_s21 = scalar_select %p3610_p6, 1, 0 }
  0xe9   : > { %s3983_s19 = scalar_select %p3617_p5, 1, 0 }
  0xea   : > { %s3984_s10 = scalar_select %p3621_p8, 1, 0 }
  0xeb   : > { %s2221_s20 = sshll.u32 %s710_s28, 4  ;;  %s2288_s18 = sshll.u32 %s3268_s24, 8 }
  0xec   : > { %s3985_s2 = sld [smem:[#allocation42_spill]]  ;;  %s714_s0 = scalar_lea.vmem [#allocation2], %s2221_s20 }
  0xed   : > { %s721_s30 = sshll.u32 %s714_s0, 4  ;;  %p3635_p4 = pnand %p2572_p3, %p3604_p12  ;;  %s3631_s30 = int_to_ptr.vmem [resolvable:$true] %s721_s30 }
  0xee   : > { %s3639_s6 = scalar_lea.sflag [#allocation3], %s710_s28 }
  0xef   : > { %p3146_p7 = pneg %p3635_p4 }
  0xf2   : > { %s3629_s27 = scalar_lea.hbm %s3985_s2, %s2288_s18  ;;  %s3149_s20 = scalar_lea.hbm %s3985_s2, 512 }
  0xf3   : > { %s3144_s7 = scalar_lea.hbm %s3629_s27, 256  ;;  %p3150_p11 = scmp.lt.s32.totalorder %s3629_s27, %s3985_s2 }
  0xf4   : > { %p3145_p1 = scmp.ne.s32.totalorder %s3629_s27, %s3144_s7  ;;  %p3151_p12 = scmp.lt.s32.totalorder %s3149_s20, %s3144_s7 }
  0xf6   : > { %p3147_p9 = pnand %p3146_p7, %p3145_p1  ;;  %p3152_p0 = por %p3151_p12, %p3150_p11 }
  0xf8   : > { %p3148_p10 = pneg %p3147_p9 }
  0xfa   : > { %p3153_p13 = pnand %p3152_p0, %p3148_p10 }
  0xfc   : > { %3156 = shalt.err (!%p3153_p13)
}
  0xfd   : > { %s3157_s29 = scalar_lea.vmem %s3631_s30, 256  ;;  %s3290_s28 = smov [#allocation2]  }
  0xfe   : > { %p3158_p2 = scmp.ne.s32.totalorder %s3631_s30, %s3157_s29  ;;  %s3162_s8 = sshll.u32 %s3290_s28, 4  ;;  %s3163_s8 = int_to_ptr.vmem [resolvable:$false] %s3162_s8 }
  0xff   : > { %s3164_s18 = scalar_lea.vmem %s3163_s8, 512  ;;  %p3165_p9 = scmp.lt.s32.totalorder %s3631_s30, %s3163_s8 }
 0x100   : > { %p3160_p3 = pnand %p3158_p2, %p3146_p7  ;;  %p3166_p8 = scmp.lt.s32.totalorder %s3164_s18, %s3157_s29 }
 0x102   : > { %p3161_p1 = pneg %p3160_p3  ;;  %p3167_p5 = por %p3166_p8, %p3165_p9 }
 0x104   : > { %p3168_p6 = pnand %p3167_p5, %p3161_p1 }
 0x106   : > { %3171 = shalt.err (!%p3168_p6)
}
 0x107   : > { %s3987_s7 = smov 8   ;;  %s3988_s25 = smov 128  }
 0x108   : > { %2551 = dma.hbm_to_vmem [thread:$0]  (!%p3635_p4), %s3629_s27, 256, %s3631_s30, %s3639_s6, %s3988_s25, %s3988_s25, %s3987_s7  }
 0x109   : > { %s3989_s20 = sld [smem:[#allocation41_spill]] }
 0x10f   : > { %p3990_p7 = scmp.ne.s32.totalorder %s3989_s20, 0 }
 0x110   : > { %s3666_s3 = sand.u32 (!%p3990_p7), 1, %s3260_s22   ;;  %p3991_p6 = scmp.ne.s32.totalorder (!%p3990_p7), %s3982_s21, 0 }
 0x111   : > { %733 = sbr.rel (%p3990_p7) target bundleno = 2803 (0xaf3), region = 100  ;;  %s2225_s8 = sshll.u32 (!%p3990_p7), %s3666_s3, 4 }
 0x112   : > { %s736_s0 = scalar_lea.sflag (!%p3990_p7), [#allocation3], %s3666_s3  ;;  %s739_s5 = scalar_lea.vmem (!%p3990_p7), [#allocation2], %s2225_s8 }
 0x116   : > { %3215 = dma.done.wait (%p3991_p6), %s736_s0, 256  }
 0x117   : > { %3217 = vsyncadd (%p3991_p6), %s736_s0, 4294967040  ;;  %s3992_s6 = sld [smem:[#allocation40_spill]] }
 0x11d   : > { %p3993_p5 = scmp.eq.s32.totalorder %s3992_s6, 0 }
 0x11f   : > { %3219 = dma.done.wait (%p3993_p5), [#allocation6], 272   ;;  %p3994_p8 = pmov %p3993_p5 }
 0x120   : > { %p3995_p4 = pmov %p3993_p5 }
 0x121   : > { %3221 = vsyncadd (%p3994_p8), [#allocation6], 4294967024 }
 0x122   : > { %3223 = dma.done.wait (%p3995_p4), [#allocation9], 272   ;;  %p3996_p10 = pmov %p3995_p4 }
 0x123   : > { %p3997_p11 = pmov %p3995_p4 }
 0x124   : > { %3225 = vsyncadd (%p3996_p10), [#allocation9], 4294967024 }
 0x125   : > { %3227 = dma.done.wait (%p3997_p11), [#allocation12], 272   ;;  %p3998_p12 = pmov %p3995_p4 }
 0x126   : > { %p3999_p0 = pmov %p3995_p4 }
 0x127   : > { %3229 = vsyncadd (%p3998_p12), [#allocation12], 4294967024 }
 0x128   : > { %3231 = dma.done.wait (%p3999_p0), [#allocation15], 272   ;;  %p4000_p13 = pmov %p3999_p0 }
 0x129   : > { %p4001_p2 = pmov %p3999_p0 }
 0x12a   : > { %3233 = vsyncadd (%p4000_p13), [#allocation15], 4294967024 }
 0x12b   : > { %3235 = dma.done.wait (%p4001_p2), [#allocation18], 32   ;;  %p4002_p3 = pmov %p3999_p0 }
 0x12c   : > { %p4003_p1 = pmov %p3999_p0 }
 0x12d   : > { %3237 = vsyncadd (%p4002_p3), [#allocation18], 4294967264 }
 0x12e   : > { %3239 = dma.done.wait (%p4003_p1), [#allocation21], 32   ;;  %p4004_p9 = pmov %p3999_p0 }
 0x12f   : > { %p4005_p7 = pmov %p3999_p0 }
 0x130   : > { %3241 = vsyncadd (%p4004_p9), [#allocation21], 4294967264 }
 0x131   : > { %3243 = dma.done.wait (%p4005_p7), [#allocation24], 272   ;;  %p4006_p6 = pmov %p3999_p0 }
 0x132   : > { %p4007_p5 = pmov %p3999_p0 }
 0x133   : > { %3245 = vsyncadd (%p4006_p6), [#allocation24], 4294967024 }
 0x134   : > { %3247 = dma.done.wait (%p4007_p5), [#allocation27], 272   ;;  %p4008_p8 = pmov %p3999_p0 }
 0x135   : > { %vm868_vm0 = vcmask 261120   ;;  %v3708_v0 = vld [vmem:[%s739_s5] sm:$0xff]  ;;  %v3710_v1 = vld [vmem:[%s739_s5 + $0x8] sm:$0xff]  ;;  %v3291_v16 = vmov 0.0   ;;  %vm3292_vm1 = vmmov 0   ;;  %s3293_s27 = smov 120  }
 0x136   : > { %3249 = vsyncadd (%p4008_p8), [#allocation27], 4294967024  ;;  %v869_v2 = vsel %vm868_vm0, %v3708_v0, 0.0  ;;  %v872_v3 = vsel %vm868_vm0, %v3710_v1, 0.0  ;;  %v2666_v14 = vld [vmem:[#allocation13 + $0x8] sm:$0xff]   ;;  %v2668_v15 = vld [vmem:[#allocation10 + $0x8] sm:$0xff]   ;;  %2335 = vmatprep.subr.bf16.mxu1 %v3291_v16  ;;  %2339 = vmatprep.mubr.msk.bf16.mxu1 %vm3292_vm1, %v3291_v16  ;;  %v3730_v19 = vpack.c.bf16 %v3710_v1, %v3708_v0 }
 0x137   : > { %870 = vadd.xlane.f32.xlu0 %v869_v2  ;;  %2336 = vmatpush3.bf16.msra.mxu1 %v2666_v14  ;;  %v2667_v17 = vld [vmem:[#allocation13] sm:$0xff]   ;;  %v2669_v18 = vld [vmem:[#allocation10] sm:$0xff]   ;;  %v2243_v28 = vld [vmem:[#allocation7] ss:$0 sm:$0xff]  ;;  %vm1118_vm2 = vcmask 64512   ;;  %s3294_s21 = smov 104  }
 0x138   : > { %2327 = vmatprep.subr.bf16.mxu0 %v3291_v16  ;;  %2337 = vmatprep.subr.bf16.mxu1 %v3291_v16  ;;  %v2244_v32 = vld [vmem:[#allocation8] ss:$0 sm:$0xff]  ;;  %v2249_v37 = vld [vmem:[#allocation14] ss:$0 sm:$0xff]  ;;  %v2245_v46 = vld [vmem:[#allocation11] ss:$0 sm:$0xff] }
 0x139   : > { %2328 = vmatpush3.bf16.msra.mxu0 %v2668_v15  ;;  %2331 = vmatprep.mubr.msk.bf16.mxu0 %vm3292_vm1, %v3291_v16  ;;  %s3295_s30 = smov 112   ;;  %v2670_v58 = vld [vmem:[#allocation16 + $0x8] sm:$0xff]   ;;  %v2671_v59 = vld [vmem:[#allocation16] sm:$0xff]   ;;  %vm1166_vm3 = vcmask 130048   ;;  %s4009_s18 = sld [smem:[#allocation51_spill]]  ;;  %vm1628_vm4 = vcmask 195584  }
 0x13a   : > { %2329 = vmatprep.subr.bf16.mxu0 %v3291_v16  ;;  %s3951_s7 = smov 8   ;;  %s3297_s25 = smov 16  }
 0x13b   : > { %873 = vadd.xlane.f32.xlu0 %v872_v3  ;;  %2338 = vmatpush3.bf16.msra.mxu1 %v2667_v17  ;;  %s3298_s5 = smov 24   ;;  %s4011_s0 = sld [smem:[#allocation53_spill]] }
 0x13c   : > { %2351 = vmatprep.subr.bf16.mxu1 %v3291_v16  ;;  %p4013_p10 = scmp.ne.s32.totalorder %s3983_s19, 0 }
 0x13d   : > { %2330 = vmatpush3.bf16.msra.mxu0 %v2669_v18 }
 0x13e   : > { %2343 = vmatprep.subr.bf16.mxu0 %v3291_v16  ;;  %2340 = vmatmul.mubr.msk.bf16.vlgmr.msra.gmra.mxu1 %vm868_vm0, %v3730_v19 }
 0x13f   : > { %2353 = vmatprep.mubr.msk.bf16.mxu1 %vm3292_vm1, %v3291_v16 }
 0x1c0   : > { %v871_v4 = vpop.xlane.xlu0 %870 }
 0x1c1   : > { %v876_v5 = vmul.f32 0.03125, %v871_v4 }
 0x1c3   : > { %v878_v6 = vsub.f32 %v3708_v0, %v876_v5  ;;  %v1111_v5 = vld [vmem:[#allocation5] sm:$0xff] }
 0x1c4   : > { %v874_v7 = vpop.xlane.xlu0 %873 }
 0x1c5   : > { %v877_v8 = vmul.f32 0.03125, %v874_v7  ;;  %v880_v9 = vmul.f32 %v878_v6, %v878_v6 }
 0x1c7   : > { %v879_v10 = vsub.f32 %v3710_v1, %v877_v8  ;;  %v882_v11 = vsel %vm868_vm0, %v880_v9, 0.0  ;;  %v1112_v9 = vld [vmem:[#allocation5 + $0x8] sm:$0xff] }
 0x1c8   : > { %883 = vadd.xlane.f32.xlu1 %v882_v11 }
 0x1c9   : > { %v881_v12 = vmul.f32 %v879_v10, %v879_v10 }
 0x1cb   : > { %v885_v13 = vsel %vm868_vm0, %v881_v12, 0.0 }
 0x1cc   : > { %886 = vadd.xlane.f32.xlu1 %v885_v13 }
 0x1fe   : > { %v1040_v38 = vpop.f32.mrf.mxu1 }
 0x1ff   : > { %v1041_v40 = vadd.f32 %v2249_v37, %v1040_v38 }
 0x200   : > { %v2341_v39 = vpop.f32.mrf.mxu1 }
 0x202   : > { %v1043_v41 = vpop.f32.mrf.mxu1 }
 0x203   : > { %v1044_v42 = vadd.f32 %v2249_v37, %v1043_v41 }
 0x204   : > { %v2342_v43 = vpop.f32.mrf.mxu1 }
 0x205   : > { %v1116_v44 = vpack.c.bf16 %v1044_v42, %v1041_v40 }
 0x207   : > { %1238 = vrot.lane.b32.xlu0 %v1116_v44, %s3293_s27  ;;  %v1123_v45 = vsel %vm1118_vm2, %v1116_v44, 0 }
 0x208   : > { %2352 = vmatpush3.bf16.xpose.msra.mxu1 %v1123_v45 }
 0x209   : > { %2363 = vmatprep.subr.bf16.mxu1 %v3291_v16 }
 0x20b   : > { %1481 = vrot.lane.b32.xlu0 %v1116_v44, %s3294_s21 }
 0x251   : > { %v884_v20 = vpop.xlane.xlu1 %883 }
 0x252   : > { %v888_v21 = vmul.f32 0.03125, %v884_v20 }
 0x254   : > { %v890_v22 = vadd.f32 1e-05, %v888_v21 }
 0x255   : > { %v887_v23 = vpop.xlane.xlu1 %886 }
 0x256   : > { %2680 = vrsqrt.f32 %v890_v22  ;;  %v889_v24 = vmul.f32 0.03125, %v887_v23 }
 0x258   : > { %v891_v25 = vadd.f32 1e-05, %v889_v24 }
 0x25a   : > { %2682 = vrsqrt.f32 %v891_v25 }
 0x263   : > { %v2681_v26 = vpop.eup %2680 }
 0x264   : > { %v894_v27 = vmul.f32 %v2681_v26, %v878_v6 }
 0x266   : > { %v902_v31 = vmul.f32 %v2243_v28, %v894_v27 }
 0x267   : > { %v2683_v29 = vpop.eup %2682 }
 0x268   : > { %v895_v30 = vmul.f32 %v2683_v29, %v879_v10  ;;  %v910_v34 = vadd.f32 %v2244_v32, %v902_v31 }
 0x26a   : > { %v903_v33 = vmul.f32 %v2243_v28, %v895_v30 }
 0x26c   : > { %v911_v35 = vadd.f32 %v2244_v32, %v903_v33 }
 0x26e   : > { %v912_v36 = vpack.c.bf16 %v911_v35, %v910_v34 }
 0x270   : > { %2332 = vmatmul.mubr.msk.bf16.vlgmr.msra.gmra.mxu0 %vm868_vm0, %v912_v36 }
 0x271   : > { %2347 = vmatprep.mubr.msk.bf16.mxu0 %vm3292_vm1, %v3291_v16  ;;  %2344 = vmatpush3.bf16.msra.mxu0 %v2670_v58 }
 0x272   : > { %2345 = vmatprep.subr.bf16.mxu0 %v3291_v16 }
 0x275   : > { %2346 = vmatpush3.bf16.msra.mxu0 %v2671_v59 }
 0x276   : > { %2357 = vmatprep.subr.bf16.mxu0 %v3291_v16 }
 0x278   : > { %2348 = vmatmul.mubr.msk.bf16.vlgmr.msra.gmra.mxu0 %vm868_vm0, %v3730_v19 }
 0x279   : > { %v1239_v55 = vpop.permute.xlu0 %1238  ;;  %2359 = vmatprep.mubr.msk.bf16.mxu0 %vm3292_vm1, %v3291_v16 }
 0x27a   : > { %v1244_v57 = vsel %vm1118_vm2, %v1239_v55, 0 }
 0x27d   : > { %v1482_v63 = vpop.permute.xlu0 %1481 }
 0x27e   : > { %v1487_v3 = vsel %vm1118_vm2, %v1482_v63, 0 }
 0x330   : > { %v973_v47 = vpop.f32.mrf.mxu0 }
 0x331   : > { %v974_v49 = vadd.f32 %v2245_v46, %v973_v47 }
 0x332   : > { %v2333_v48 = vpop.f32.mrf.mxu0 }
 0x333   : > { %v1113_v53 = vmul.f32 0.35355338, %v974_v49 }
 0x334   : > { %v976_v50 = vpop.f32.mrf.mxu0 }
 0x335   : > { %v977_v51 = vadd.f32 %v2245_v46, %v976_v50 }
 0x336   : > { %v2334_v52 = vpop.f32.mrf.mxu0 }
 0x337   : > { %v1114_v54 = vmul.f32 0.35355338, %v977_v51  ;;  %v2253_v51 = vld [vmem:[#allocation17] ss:$0 sm:$0xff] }
 0x338   : > { %v1104_v50 = vpop.f32.mrf.mxu0 }
 0x339   : > { %v1115_v56 = vpack.c.bf16 %v1114_v54, %v1113_v53  ;;  %v1105_v53 = vadd.f32 %v2253_v51, %v1104_v50 }
 0x33a   : > { %v2349_v52 = vpop.f32.mrf.mxu0 }
 0x33b   : > { %1235 = vrot.lane.b32.xlu1 %v1115_v56, %s3293_s27  ;;  %2354 = vmatmul.mubr.msk.bf16.vlgmr.msra.gmra.mxu1 %vm1118_vm2, %v1115_v56 }
 0x33c   : > { %2364 = vmatpush3.bf16.xpose.msra.mxu1 %v1244_v57  ;;  %2365 = vmatprep.mubr.msk.bf16.mxu1 %vm3292_vm1, %v3291_v16  ;;  %v1107_v54 = vpop.f32.mrf.mxu0 }
 0x33d   : > { %2375 = vmatprep.subr.bf16.mxu1 %v3291_v16  ;;  %v1108_v55 = vadd.f32 %v2253_v51, %v1107_v54 }
 0x33f   : > { %1360 = vrot.lane.b32.xlu1 %v1116_v44, %s3295_s30  ;;  %v1117_v57 = vpack.c.bf16 %v1108_v55, %v1105_v53 }
 0x341   : > { %2358 = vmatpush3.bf16.msra.mxu0 %v1117_v57 }
 0x342   : > { %2369 = vmatprep.subr.bf16.mxu0 %v3291_v16 }
 0x343   : > { %1358 = vrot.lane.b32.xlu1 %v1115_v56, %s3295_s30 }
 0x347   : > { %1479 = vrot.lane.b32.xlu1 %v1115_v56, %s3294_s21  ;;  %v2350_v56 = vpop.f32.mrf.mxu0 }
 0x3ad   : > { %v1236_v60 = vpop.permute.xlu1 %1235 }
 0x3ae   : > { %2366 = vmatmul.mubr.msk.bf16.vlgmr.msra.gmra.mxu1 %vm1118_vm2, %v1236_v60 }
 0x3af   : > { %2377 = vmatprep.mubr.msk.bf16.mxu1 %vm3292_vm1, %v3291_v16 }
 0x3b1   : > { %v1361_v61 = vpop.permute.xlu1 %1360 }
 0x3b2   : > { %v1366_v62 = vsel %vm1118_vm2, %v1361_v61, 0 }
 0x3b3   : > { %2376 = vmatpush3.bf16.xpose.msra.mxu1 %v1366_v62 }
 0x3b4   : > { %2387 = vmatprep.subr.bf16.mxu1 %v3291_v16 }
 0x3b5   : > { %v1359_v2 = vpop.permute.xlu1 %1358 }
 0x3b9   : > { %v1480_v4 = vpop.permute.xlu1 %1479 }
 0x3ba   : > { %2378 = vmatmul.mubr.msk.bf16.vlgmr.msra.gmra.mxu1 %vm1118_vm2, %v1359_v2 }
 0x3bb   : > { %2388 = vmatpush3.bf16.xpose.msra.mxu1 %v1487_v3  ;;  %2389 = vmatprep.mubr.msk.bf16.mxu1 %vm3292_vm1, %v3291_v16 }
 0x3bc   : > { %2399 = vmatprep.subr.bf16.mxu1 %v3291_v16 }
 0x3c2   : > { %2390 = vmatmul.mubr.msk.bf16.vlgmr.msra.gmra.mxu1 %vm1118_vm2, %v1480_v4 }
 0x3c3   : > { %2403 = vmatprep.mubr.msk.bf16.mxu1 %vm3292_vm1, %v3291_v16 }
 0x3fb   : > { %v1159_v6 = vpop.f32.mrf.mxu1 }
 0x3fc   : > { %v1160_v7 = vadd.f32 %v1159_v6, %v1111_v5 }
 0x3fd   : > { %v2355_v8 = vpop.f32.mrf.mxu1 }
 0x3fe   : > { %v1167_v10 = vsel %vm1166_vm3, %v1160_v7, -inf }
 0x3ff   : > { %1168 = vmax.xlane.f32.xlu0 %v1167_v10  ;;  %v1162_v11 = vpop.f32.mrf.mxu1 }
 0x400   : > { %v1163_v12 = vadd.f32 %v1162_v11, %v1112_v9 }
 0x401   : > { %v2356_v13 = vpop.f32.mrf.mxu1 }
 0x402   : > { %v1170_v14 = vsel %vm1166_vm3, %v1163_v12, -inf }
 0x403   : > { %1171 = vmax.xlane.f32.xlu1 %v1170_v14 }
 0x46e   : > { %v1280_v15 = vpop.f32.mrf.mxu1 }
 0x46f   : > { %v1281_v17 = vadd.f32 %v1280_v15, %v1111_v5 }
 0x470   : > { %v2367_v18 = vpop.f32.mrf.mxu1 }
 0x471   : > { %v1287_v19 = vsel %vm1166_vm3, %v1281_v17, -inf }
 0x472   : > { %1288 = vmax.xlane.f32.xlu0 %v1287_v19  ;;  %v1283_v20 = vpop.f32.mrf.mxu1 }
 0x473   : > { %v1284_v21 = vadd.f32 %v1283_v20, %v1112_v9 }
 0x474   : > { %v2368_v22 = vpop.f32.mrf.mxu1 }
 0x475   : > { %v1290_v23 = vsel %vm1166_vm3, %v1284_v21, -inf }
 0x476   : > { %1291 = vmax.xlane.f32.xlu0 %v1290_v23 }
 0x47a   : > { %v1402_v24 = vpop.f32.mrf.mxu1 }
 0x47b   : > { %v1403_v25 = vadd.f32 %v1402_v24, %v1111_v5 }
 0x47c   : > { %v2379_v26 = vpop.f32.mrf.mxu1 }
 0x47d   : > { %v1409_v27 = vsel %vm1166_vm3, %v1403_v25, -inf }
 0x47e   : > { %1410 = vmax.xlane.f32.xlu0 %v1409_v27  ;;  %v1405_v28 = vpop.f32.mrf.mxu1 }
 0x47f   : > { %v1406_v29 = vadd.f32 %v1405_v28, %v1112_v9 }
 0x480   : > { %v2380_v30 = vpop.f32.mrf.mxu1 }
 0x481   : > { %v1412_v31 = vsel %vm1166_vm3, %v1406_v29, -inf }
 0x482   : > { %1413 = vmax.xlane.f32.xlu1 %v1412_v31  ;;  %v1523_v32 = vpop.f32.mrf.mxu1 }
 0x483   : > { %v1524_v33 = vadd.f32 %v1523_v32, %v1111_v5 }
 0x484   : > { %v2391_v34 = vpop.f32.mrf.mxu1 }
 0x485   : > { %v1530_v35 = vsel %vm1166_vm3, %v1524_v33, -inf }
 0x486   : > { %1531 = vmax.xlane.f32.xlu0 %v1530_v35  ;;  %v1526_v36 = vpop.f32.mrf.mxu1 }
 0x487   : > { %v3780_v37 = vadd.f32 %v1526_v36, %v1112_v9 }
 0x488   : > { %v1169_v38 = vpop.xlane.xlu0 %1168  ;;  %v2392_v39 = vpop.f32.mrf.mxu1 }
 0x489   : > { %v1173_v40 = vsub.f32 %v1160_v7, %v1169_v38  ;;  %v1533_v41 = vsel %vm1166_vm3, %v3780_v37, -inf }
 0x48a   : > { %1534 = vmax.xlane.f32.xlu1 %v1533_v41 }
 0x48b   : > { %v1175_v42 = vmul.f32 1.442695, %v1173_v40 }
 0x48c   : > { %v1172_v43 = vpop.xlane.xlu1 %1171 }
 0x48d   : > { %2684 = vpow2.f32 %v1175_v42  ;;  %v1174_v44 = vsub.f32 %v1163_v12, %v1172_v43 }
 0x48f   : > { %v1177_v45 = vmul.f32 1.442695, %v1174_v44 }
 0x491   : > { %2686 = vpow2.f32 %v1177_v45 }
 0x49a   : > { %v2685_v46 = vpop.eup %2684 }
 0x49b   : > { %v1179_v47 = vsel %vm1166_vm3, %v2685_v46, 0.0 }
 0x49c   : > { %1180 = vadd.xlane.f32.xlu0 %v1179_v47 }
 0x49e   : > { %v2687_v48 = vpop.eup %2686 }
 0x49f   : > { %v1182_v49 = vsel %vm1166_vm3, %v2687_v48, 0.0 }
 0x4a0   : > { %1183 = vadd.xlane.f32.xlu1 %v1182_v49 }
 0x4fb   : > { %v1289_v58 = vpop.xlane.xlu0 %1288 }
 0x4fc   : > { %v1293_v59 = vsub.f32 %v1281_v17, %v1289_v58 }
 0x4fe   : > { %v1295_v60 = vmul.f32 1.442695, %v1293_v59 }
 0x4ff   : > { %v1292_v61 = vpop.xlane.xlu0 %1291 }
 0x500   : > { %2688 = vpow2.f32 %v1295_v60  ;;  %v1294_v62 = vsub.f32 %v1284_v21, %v1292_v61 }
 0x502   : > { %v1297_v63 = vmul.f32 1.442695, %v1294_v62 }
 0x504   : > { %2690 = vpow2.f32 %v1297_v63 }
 0x507   : > { %v1411_v2 = vpop.xlane.xlu0 %1410 }
 0x508   : > { %v1415_v3 = vsub.f32 %v1403_v25, %v1411_v2 }
 0x50a   : > { %v1417_v4 = vmul.f32 1.442695, %v1415_v3  ;;  %v2672_v3 = vld [vmem:[%s4009_s18 + $0x8] sm:$0xff]  }
 0x50b   : > { %v1414_v5 = vpop.xlane.xlu1 %1413  ;;  %2400 = vmatpush3.bf16.msra.mxu1 %v2672_v3  ;;  %v2269_v3 = vld [vmem:[#allocation20] ss:$0 sm:$0xff] }
 0x50c   : > { %2692 = vpow2.f32 %v1417_v4  ;;  %v1416_v6 = vsub.f32 %v1406_v29, %v1414_v5  ;;  %2401 = vmatprep.subr.bf16.mxu1 %v3291_v16 }
 0x50d   : > { %v2689_v7 = vpop.eup %2688 }
 0x50e   : > { %v1419_v8 = vmul.f32 1.442695, %v1416_v6  ;;  %v1299_v9 = vsel %vm1166_vm3, %v2689_v7, 0.0 }
 0x50f   : > { %1300 = vadd.xlane.f32.xlu0 %v1299_v9  ;;  %v1532_v10 = vpop.xlane.xlu0 %1531 }
 0x510   : > { %2694 = vpow2.f32 %v1419_v8  ;;  %v1536_v11 = vsub.f32 %v1524_v33, %v1532_v10 }
 0x511   : > { %v2691_v12 = vpop.eup %2690 }
 0x512   : > { %v1538_v13 = vmul.f32 1.442695, %v1536_v11  ;;  %v1302_v14 = vsel %vm1166_vm3, %v2691_v12, 0.0  ;;  %v2673_v11 = vld [vmem:[%s4009_s18] sm:$0xff]  }
 0x513   : > { %1303 = vadd.xlane.f32.xlu1 %v1302_v14  ;;  %v1535_v22 = vpop.xlane.xlu1 %1534  ;;  %2402 = vmatpush3.bf16.msra.mxu1 %v2673_v11 }
 0x514   : > { %2696 = vpow2.f32 %v1538_v13  ;;  %v1537_v30 = vsub.f32 %v3780_v37, %v1535_v22  ;;  %2415 = vmatprep.subr.bf16.mxu1 %v3291_v16 }
 0x516   : > { %v1540_v31 = vmul.f32 1.442695, %v1537_v30 }
 0x519   : > { %v2693_v15 = vpop.eup %2692 }
 0x51a   : > { %v1421_v17 = vsel %vm1166_vm3, %v2693_v15, 0.0 }
 0x51b   : > { %1422 = vadd.xlane.f32.xlu0 %v1421_v17 }
 0x51d   : > { %v2695_v18 = vpop.eup %2694 }
 0x51e   : > { %v1424_v19 = vsel %vm1166_vm3, %v2695_v18, 0.0 }
 0x51f   : > { %1425 = vadd.xlane.f32.xlu1 %v1424_v19 }
 0x521   : > { %v2697_v20 = vpop.eup %2696 }
 0x522   : > { %v1542_v21 = vsel %vm1166_vm3, %v2697_v20, 0.0 }
 0x523   : > { %1543 = vadd.xlane.f32.xlu0 %v1542_v21 }
 0x525   : > { %v1181_v23 = vpop.xlane.xlu0 %1180 }
 0x526   : > { %2698 = vrcp.f32 %v1181_v23 }
 0x529   : > { %v1184_v24 = vpop.xlane.xlu1 %1183 }
 0x52a   : > { %2700 = vrcp.f32 %v1184_v24 }
 0x52b   : > { %2702 = vpow2.f32 %v1540_v31 }
 0x530   : > { %1432 = vrot.lane.b32.xlu1 %v1117_v57, %s3295_s30  ;;  %s4010_s30 = sld [smem:[#allocation52_spill]] }
 0x533   : > { %v2699_v25 = vpop.eup %2698 }
 0x534   : > { %v1187_v27 = vmul.f32 %v2699_v25, %v2685_v46 }
 0x537   : > { %v2701_v26 = vpop.eup %2700 }
 0x538   : > { %v1188_v28 = vmul.f32 %v2701_v26, %v2687_v48  ;;  %v2703_v32 = vpop.eup %2702 }
 0x539   : > { %1311 = vrot.lane.b32.xlu0 %v1117_v57, %s3293_s27  ;;  %v1545_v33 = vsel %vm1166_vm3, %v2703_v32, 0.0  ;;  %s859_s27 = scalar_lea.vmem [#allocation29], %s2225_s8 }
 0x53a   : > { %v1189_v29 = vpack.c.bf16 %v1188_v28, %v1187_v27 }
 0x53c   : > { %2360 = vmatmul.mubr.msk.bf16.vlgmr.msra.gmra.mxu0 %vm1166_vm3, %v1189_v29 }
 0x53d   : > { %2371 = vmatprep.mubr.msk.bf16.mxu0 %vm3292_vm1, %v3291_v16 }
 0x554   : > { %1546 = vadd.xlane.f32.xlu1 %v1545_v33 }
 0x565   : > { %1553 = vrot.lane.b32.xlu1 %v1117_v57, %s3294_s21  ;;  %s1977_s21 = sshll.u32 %s859_s27, 4  ;;  %s3871_s21 = int_to_ptr.vmem [resolvable:$true] %s1977_s21 }
 0x598   : > { %v1301_v35 = vpop.xlane.xlu0 %1300 }
 0x59c   : > { %v1304_v34 = vpop.xlane.xlu1 %1303 }
 0x59d   : > { %2704 = vrcp.f32 %v1304_v34  ;;  %v2265_v34 = vld [vmem:[#allocation19] ss:$0 sm:$0xff] }
 0x59e   : > { %2706 = vrcp.f32 %v1301_v35 }
 0x5a4   : > { %v1423_v36 = vpop.xlane.xlu0 %1422 }
 0x5a5   : > { %2708 = vrcp.f32 %v1423_v36 }
 0x5a8   : > { %v1426_v37 = vpop.xlane.xlu1 %1425 }
 0x5a9   : > { %2710 = vrcp.f32 %v1426_v37 }
 0x5aa   : > { %v2705_v38 = vpop.eup %2704 }
 0x5ab   : > { %v2707_v40 = vpop.eup %2706  ;;  %v1308_v41 = vmul.f32 %v2705_v38, %v2691_v12 }
 0x5ac   : > { %v1544_v39 = vpop.xlane.xlu0 %1543  ;;  %v1307_v43 = vmul.f32 %v2707_v40, %v2689_v7  ;;  %v1433_v46 = vpop.permute.xlu1 %1432 }
 0x5ad   : > { %2712 = vrcp.f32 %v1544_v39 }
 0x5ae   : > { %v1309_v44 = vpack.c.bf16 %v1308_v41, %v1307_v43 }
 0x5b0   : > { %v1312_v42 = vpop.permute.xlu0 %1311 }
 0x5b1   : > { %2370 = vmatpush3.bf16.msra.mxu0 %v1312_v42 }
 0x5b2   : > { %2381 = vmatprep.subr.bf16.mxu0 %v3291_v16  ;;  %v2709_v45 = vpop.eup %2708 }
 0x5b3   : > { %v1429_v48 = vmul.f32 %v2709_v45, %v2693_v15 }
 0x5b4   : > { %2372 = vmatmul.mubr.msk.bf16.vlgmr.msra.gmra.mxu0 %vm1166_vm3, %v1309_v44 }
 0x5b5   : > { %2382 = vmatpush3.bf16.msra.mxu0 %v1433_v46  ;;  %2383 = vmatprep.mubr.msk.bf16.mxu0 %vm3292_vm1, %v3291_v16 }
 0x5b6   : > { %v2711_v47 = vpop.eup %2710  ;;  %2393 = vmatprep.subr.bf16.mxu0 %v3291_v16 }
 0x5b7   : > { %v1430_v49 = vmul.f32 %v2711_v47, %v2695_v18 }
 0x5b9   : > { %v1431_v50 = vpack.c.bf16 %v1430_v49, %v1429_v48 }
 0x5ba   : > { %v2713_v53 = vpop.eup %2712 }
 0x5bb   : > { %v1550_v55 = vmul.f32 %v2713_v53, %v2697_v20  ;;  %v2674_v53 = vld [vmem:[#allocation23 + $0x8] sm:$0xff]  }
 0x5bc   : > { %2384 = vmatmul.mubr.msk.bf16.vlgmr.msra.gmra.mxu0 %vm1166_vm3, %v1431_v50 }
 0x5bd   : > { %2395 = vmatprep.mubr.msk.bf16.mxu0 %vm3292_vm1, %v3291_v16 }
 0x5dd   : > { %v1547_v51 = vpop.xlane.xlu1 %1546 }
 0x5de   : > { %2714 = vrcp.f32 %v1547_v51 }
 0x5e1   : > { %v1554_v52 = vpop.permute.xlu1 %1553 }
 0x5e2   : > { %2394 = vmatpush3.bf16.msra.mxu0 %v1554_v52 }
 0x5e3   : > { %2407 = vmatprep.subr.bf16.mxu0 %v3291_v16 }
 0x5eb   : > { %v2715_v54 = vpop.eup %2714 }
 0x5ec   : > { %v1551_v56 = vmul.f32 %v2715_v54, %v2703_v32  ;;  %v2675_v54 = vld [vmem:[#allocation26 + $0x8] sm:$0xff]  }
 0x5ee   : > { %v1552_v57 = vpack.c.bf16 %v1551_v56, %v1550_v55  ;;  %v2676_v55 = vld [vmem:[#allocation23] sm:$0xff]   ;;  %v2677_v56 = vld [vmem:[#allocation26] sm:$0xff]  }
 0x5f0   : > { %2396 = vmatmul.mubr.msk.bf16.vlgmr.msra.gmra.mxu0 %vm1166_vm3, %v1552_v57 }
 0x5f1   : > { %2411 = vmatprep.mubr.msk.bf16.mxu0 %vm3292_vm1, %v3291_v16  ;;  %2408 = vmatpush3.bf16.msra.mxu0 %v2674_v53 }
 0x5f2   : > { %2409 = vmatprep.subr.bf16.mxu0 %v3291_v16 }
 0x5f5   : > { %2410 = vmatpush3.bf16.msra.mxu0 %v2676_v55 }
 0x5f6   : > { %2423 = vmatprep.subr.bf16.mxu0 %v3291_v16 }
 0x5fc   : > { %v1227_v58 = vpop.f32.mrf.mxu0 }
 0x5fe   : > { %v2361_v59 = vpop.f32.mrf.mxu0 }
 0x600   : > { %v1230_v60 = vpop.f32.mrf.mxu0 }
 0x602   : > { %v2362_v61 = vpop.f32.mrf.mxu0 }
 0x674   : > { %v1351_v62 = vpop.f32.mrf.mxu0 }
 0x676   : > { %v2373_v63 = vpop.f32.mrf.mxu0 }
 0x678   : > { %v1354_v2 = vpop.f32.mrf.mxu0 }
 0x679   : > { %v2651_v4 = vpack.i.bf16 %v1354_v2, %v1351_v62 }
 0x67a   : > { %v2374_v5 = vpop.f32.mrf.mxu0 }
 0x67b   : > { %2652 = vrot.lane.b32.xlu1 %v2651_v4, %s3951_s7 }
 0x67c   : > { %v1472_v6 = vpop.f32.mrf.mxu0 }
 0x67e   : > { %v2385_v7 = vpop.f32.mrf.mxu0 }
 0x67f   : > { %v2270_v7 = vld [vmem:[#allocation22] ss:$0 sm:$0xff] }
 0x680   : > { %v1475_v8 = vpop.f32.mrf.mxu0 }
 0x681   : > { %v2656_v9 = vpack.i.bf16 %v1475_v8, %v1472_v6 }
 0x682   : > { %v2386_v10 = vpop.f32.mrf.mxu0 }
 0x683   : > { %2657 = vrot.lane.b32.xlu0 %v2656_v9, %s3297_s25  ;;  %s4012_s25 = sld [smem:[#allocation54_spill]] }
 0x6b0   : > { %v1593_v12 = vpop.f32.mrf.mxu0 }
 0x6b2   : > { %v2397_v13 = vpop.f32.mrf.mxu0 }
 0x6b3   : > { %v2679_v13 = vld [vmem:[%s4010_s30] sm:$0xff]  }
 0x6b4   : > { %v1596_v14 = vpop.f32.mrf.mxu0 }
 0x6b5   : > { %v2661_v15 = vpack.i.bf16 %v1596_v14, %v1593_v12  ;;  %v2678_v12 = vld [vmem:[%s4010_s30 + $0x8] sm:$0xff]   ;;  %v2275_v14 = vld [vmem:[#allocation28] ss:$0 sm:$0xff] }
 0x6b6   : > { %v2398_v17 = vpop.f32.mrf.mxu0 }
 0x6b7   : > { %2662 = vrot.lane.b32.xlu1 %v2661_v15, %s3298_s5  ;;  %s2289_s5 = sshll.u32 %s3992_s6, 8  ;;  %s3172_s6 = scalar_lea.vmem %s3871_s21, 256 }
 0x6b8   : > { %s3868_s20 = scalar_lea.hbm %s4012_s25, %s2289_s5  ;;  %p3173_p4 = scmp.ne.s32.totalorder %s3871_s21, %s3172_s6 }
 0x6ba   : > { %p3174_p11 = pnand %p3173_p4, %p4013_p10 }
 0x6bc   : > { %p3175_p12 = pneg %p3174_p11 }
 0x6ed   : > { %v2653_v18 = vpop.permute.xlu1 %2652 }
 0x6ee   : > { %v2655_v20 = vunpack.i.h.bf16 %v2653_v18  ;;  %v2654_v21 = vunpack.i.l.bf16 %v2653_v18 }
 0x6f0   : > { %v1625_v25 = vsel %vm1118_vm2, %v1230_v60, %v2655_v20  ;;  %v1624_v26 = vsel %vm1118_vm2, %v1227_v58, %v2654_v21 }
 0x6f5   : > { %v2658_v19 = vpop.permute.xlu0 %2657 }
 0x6f6   : > { %v2660_v22 = vunpack.i.h.bf16 %v2658_v19  ;;  %v2659_v23 = vunpack.i.l.bf16 %v2658_v19 }
 0x6f8   : > { %v1626_v29 = vsel %vm1166_vm3, %v1624_v26, %v2659_v23  ;;  %v1627_v30 = vsel %vm1166_vm3, %v1625_v25, %v2660_v22 }
 0x729   : > { %v2663_v24 = vpop.permute.xlu1 %2662 }
 0x72a   : > { %v2665_v27 = vunpack.i.h.bf16 %v2663_v24  ;;  %v2664_v28 = vunpack.i.l.bf16 %v2663_v24 }
 0x72c   : > { %v1629_v31 = vsel %vm1628_vm4, %v1626_v29, %v2664_v28  ;;  %v1630_v32 = vsel %vm1628_vm4, %v1627_v30, %v2665_v27 }
 0x72d   : > { %v1631_v33 = vpack.c.bf16 %v1630_v32, %v1629_v31 }
 0x72f   : > { %2404 = vmatmul.mubr.msk.bf16.vlgmr.msra.gmra.mxu1 %vm868_vm0, %v1631_v33  ;;  %v2271_v33 = vld [vmem:[#allocation25] ss:$0 sm:$0xff] }
 0x730   : > { %2419 = vmatprep.mubr.msk.bf16.mxu1 %vm3292_vm1, %v3291_v16  ;;  %2416 = vmatpush3.bf16.msra.mxu1 %v2675_v54 }
 0x731   : > { %2417 = vmatprep.subr.bf16.mxu1 %v3291_v16 }
 0x734   : > { %2418 = vmatpush3.bf16.msra.mxu1 %v2677_v56 }
 0x7ef   : > { %v1692_v35 = vpop.f32.mrf.mxu1 }
 0x7f0   : > { %v1693_v36 = vadd.f32 %v2265_v34, %v1692_v35 }
 0x7f1   : > { %v2405_v37 = vpop.f32.mrf.mxu1 }
 0x7f2   : > { %v3829_v38 = vadd.f32 %v1693_v36, %v3708_v0 }
 0x7f3   : > { %v1695_v39 = vpop.f32.mrf.mxu1 }
 0x7f4   : > { %v1696_v40 = vadd.f32 %v2265_v34, %v1695_v39  ;;  %v1703_v41 = vsel %vm868_vm0, %v3829_v38, 0.0 }
 0x7f5   : > { %1704 = vadd.xlane.f32.xlu0 %v1703_v41  ;;  %v2406_v42 = vpop.f32.mrf.mxu1 }
 0x7f6   : > { %v3834_v43 = vadd.f32 %v1696_v40, %v3710_v1 }
 0x7f8   : > { %v1706_v44 = vsel %vm868_vm0, %v3834_v43, 0.0 }
 0x7f9   : > { %1707 = vadd.xlane.f32.xlu1 %v1706_v44 }
 0x87e   : > { %v1705_v45 = vpop.xlane.xlu0 %1704 }
 0x87f   : > { %v1709_v46 = vmul.f32 0.03125, %v1705_v45  ;;  %v2279_v45 = vld [vmem:[%s4011_s0] ss:$0 sm:$0xff]  ;;  %s3299_s0 = smov [#allocation29]  }
 0x880   : > { %s3176_s7 = sshll.u32 %s3299_s0, 4  ;;  %s3177_s7 = int_to_ptr.vmem [resolvable:$false] %s3176_s7 }
 0x881   : > { %v1711_v47 = vsub.f32 %v3829_v38, %v1709_v46  ;;  %s3178_s5 = scalar_lea.vmem %s3177_s7, 512  ;;  %p3179_p0 = scmp.lt.s32.totalorder %s3871_s21, %s3177_s7 }
 0x882   : > { %v1708_v0 = vpop.xlane.xlu1 %1707  ;;  %p3180_p13 = scmp.lt.s32.totalorder %s3178_s5, %s3172_s6 }
 0x883   : > { %v1710_v48 = vmul.f32 0.03125, %v1708_v0  ;;  %v1713_v49 = vmul.f32 %v1711_v47, %v1711_v47 }
 0x884   : > { %p3181_p2 = por %p3180_p13, %p3179_p0 }
 0x885   : > { %v1712_v50 = vsub.f32 %v3834_v43, %v1710_v48  ;;  %v1715_v51 = vsel %vm868_vm0, %v1713_v49, 0.0 }
 0x886   : > { %1716 = vadd.xlane.f32.xlu0 %v1715_v51  ;;  %p3182_p3 = pnand %p3181_p2, %p3175_p12 }
 0x887   : > { %v1714_v52 = vmul.f32 %v1712_v50, %v1712_v50 }
 0x889   : > { %v1718_v1 = vsel %vm868_vm0, %v1714_v52, 0.0 }
 0x88a   : > { %1719 = vadd.xlane.f32.xlu0 %v1718_v1 }
 0x90f   : > { %v1717_v57 = vpop.xlane.xlu0 %1716 }
 0x910   : > { %v1721_v58 = vmul.f32 0.03125, %v1717_v57 }
 0x912   : > { %v1723_v59 = vadd.f32 1e-05, %v1721_v58 }
 0x913   : > { %v1720_v60 = vpop.xlane.xlu0 %1719 }
 0x914   : > { %2716 = vrsqrt.f32 %v1723_v59  ;;  %v1722_v61 = vmul.f32 0.03125, %v1720_v60 }
 0x916   : > { %v1724_v62 = vadd.f32 1e-05, %v1722_v61 }
 0x918   : > { %2718 = vrsqrt.f32 %v1724_v62 }
 0x921   : > { %v2717_v63 = vpop.eup %2716 }
 0x922   : > { %v1727_v2 = vmul.f32 %v2717_v63, %v1711_v47 }
 0x924   : > { %v1735_v6 = vmul.f32 %v2269_v3, %v1727_v2 }
 0x925   : > { %v2719_v4 = vpop.eup %2718 }
 0x926   : > { %v1728_v5 = vmul.f32 %v2719_v4, %v1712_v50  ;;  %v1743_v9 = vadd.f32 %v2270_v7, %v1735_v6 }
 0x928   : > { %v1736_v8 = vmul.f32 %v2269_v3, %v1728_v5 }
 0x92a   : > { %v1744_v10 = vadd.f32 %v2270_v7, %v1736_v8 }
 0x92c   : > { %v1745_v11 = vpack.c.bf16 %v1744_v10, %v1743_v9 }
 0x92e   : > { %2412 = vmatmul.mubr.msk.bf16.vlgmr.msra.gmra.mxu0 %vm868_vm0, %v1745_v11  ;;  %2420 = vmatmul.mubr.msk.bf16.vlgmr.msra.gmra.mxu1 %vm868_vm0, %v1745_v11 }
 0x92f   : > { %2427 = vmatprep.mubr.msk.bf16.mxu0 %vm3292_vm1, %v3291_v16  ;;  %2424 = vmatpush3.bf16.msra.mxu0 %v2678_v12 }
 0x930   : > { %2425 = vmatprep.subr.bf16.mxu0 %v3291_v16 }
 0x933   : > { %2426 = vmatpush3.bf16.msra.mxu0 %v2679_v13 }
 0x9ee   : > { %v1806_v15 = vpop.f32.mrf.mxu0  ;;  %v1870_v17 = vpop.f32.mrf.mxu1 }
 0x9ef   : > { %v1871_v18 = vadd.f32 %v2275_v14, %v1870_v17  ;;  %v1807_v34 = vadd.f32 %v2271_v33, %v1806_v15 }
 0x9f0   : > { %v2413_v19 = vpop.f32.mrf.mxu0  ;;  %v2421_v20 = vpop.f32.mrf.mxu1 }
 0x9f1   : > { %v1877_v21 = vsub.f32 0.0, %v1871_v18  ;;  %v1887_v37 = vmul.f32 %v1871_v18, %v1807_v34 }
 0x9f2   : > { %v1809_v22 = vpop.f32.mrf.mxu0  ;;  %v1873_v23 = vpop.f32.mrf.mxu1 }
 0x9f3   : > { %v1879_v24 = vmul.f32 1.442695, %v1877_v21  ;;  %v1874_v25 = vadd.f32 %v2275_v14, %v1873_v23  ;;  %v1810_v35 = vadd.f32 %v2271_v33, %v1809_v22 }
 0x9f4   : > { %v2414_v26 = vpop.f32.mrf.mxu0  ;;  %v2422_v27 = vpop.f32.mrf.mxu1 }
 0x9f5   : > { %2720 = vpow2.f32 %v1879_v24  ;;  %v1878_v16 = vsub.f32 0.0, %v1874_v25  ;;  %v1888_v39 = vmul.f32 %v1874_v25, %v1810_v35 }
 0x9f7   : > { %v1881_v28 = vmul.f32 1.442695, %v1878_v16 }
 0x9f9   : > { %2722 = vpow2.f32 %v1881_v28 }
 0xa02   : > { %v2721_v29 = vpop.eup %2720 }
 0xa03   : > { %v1883_v30 = vadd.f32 1.0, %v2721_v29 }
 0xa05   : > { %2724 = vrcp.f32 %v1883_v30 }
 0xa06   : > { %v2723_v31 = vpop.eup %2722 }
 0xa07   : > { %v1884_v32 = vadd.f32 1.0, %v2723_v31 }
 0xa09   : > { %2726 = vrcp.f32 %v1884_v32 }
 0xa12   : > { %v2725_v36 = vpop.eup %2724 }
 0xa13   : > { %v1889_v41 = vmul.f32 %v2725_v36, %v1887_v37 }
 0xa16   : > { %v2727_v40 = vpop.eup %2726 }
 0xa17   : > { %v1890_v42 = vmul.f32 %v2727_v40, %v1888_v39 }
 0xa19   : > { %v1891_v44 = vpack.c.bf16 %v1890_v42, %v1889_v41 }
 0xa1b   : > { %2428 = vmatmul.mubr.msk.bf16.vlgmr.msra.gmra.mxu0 %vm868_vm0, %v1891_v44 }
 0xadb   : > { %v1952_v46 = vpop.f32.mrf.mxu0 }
 0xadc   : > { %v1953_v47 = vadd.f32 %v2279_v45, %v1952_v46 }
 0xadd   : > { %v2429_v0 = vpop.f32.mrf.mxu0 }
 0xade   : > { %v1959_v48 = vadd.f32 %v1953_v47, %v3829_v38 }
 0xadf   : > { %v1955_v49 = vpop.f32.mrf.mxu0 }
 0xae0   : > { %1961 = vst.msk [vmem:[%s859_s27] sm:$0xff] %vm868_vm0, %v1959_v48  ;;  %v1956_v50 = vadd.f32 %v2279_v45, %v1955_v49 }
 0xae1   : > { %v2430_v51 = vpop.f32.mrf.mxu0 }
 0xae2   : > { %v1960_v52 = vadd.f32 %v1956_v50, %v3834_v43 }
 0xae4   : > { %1962 = vst.msk [vmem:[%s859_s27 + $0x8] sm:$0xff] %vm868_vm0, %v1960_v52 }
 0xae5   : > { %3185 = shalt.err (!%p3182_p3)
}
 0xae6   : > { %s3186_s27 = scalar_lea.hbm %s3868_s20, 256  ;;  %s3190_s0 = scalar_lea.hbm %s4012_s25, 512 }
 0xae7   : > { %p3187_p1 = scmp.ne.s32.totalorder %s3868_s20, %s3186_s27  ;;  %p3191_p6 = scmp.lt.s32.totalorder %s3868_s20, %s4012_s25 }
 0xae8   : > { %p3192_p5 = scmp.lt.s32.totalorder %s3190_s0, %s3186_s27 }
 0xae9   : > { %p3188_p9 = pnand %p3187_p1, %p4013_p10 }
 0xaea   : > { %p3193_p8 = por %p3192_p5, %p3191_p6 }
 0xaeb   : > { %p3189_p7 = pneg %p3188_p9 }
 0xaed   : > { %p3194_p4 = pnand %p3193_p8, %p3189_p7 }
 0xaef   : > { %3197 = shalt.err (!%p3194_p4)
}
 0xaf0   : > { %s3300_s7 = smov 128   ;;  %s4014_s6 = smov 8  }
 0xaf1   : > { %s4015_s5 = scalar_lea.sflag [#allocation4], %s3666_s3 }
 0xaf2   : > { %2497 = dma.vmem_to_hbm [thread:$0]  (%p4013_p10), %s3871_s21, 256, %s3868_s20, %s4015_s5, %s3300_s7, %s3300_s7, %s4014_s6  }
 0xaf3 PF: > { %s1992_s29 = sand.u32 1, %s3256_s1   ;;  %p4016_p11 = scmp.ne.s32.totalorder %s3984_s10, 0 }
 0xaf4   : > { %p4017_p12 = scmp.ge.s32.totalorder %s3268_s24, 2  ;;  %s1993_s2 = scalar_lea.sflag [#allocation4], %s1992_s29 }
 0xaf6   : > { %p2553_p0 = pnand %p4017_p12, %p4016_p11 }
 0xaf8   : > { %p2554_p13 = pneg %p2553_p0 }
 0xafa   : > { %3251 = dma.done.wait (%p2554_p13), %s1993_s2, 256  }
 0xafb   : > { %3253 = vsyncadd (%p2554_p13), %s1993_s2, 4294967040  ;;  %p41_p2 = scmp.ge.s32.totalorder %s3591_s4, 4   ;;  %s4018_s1 = smov %s3260_s22 }
 0xafc   : > { %s4019_s22 = smov %s3264_s23  ;;  %s4020_s23 = smov %s3602_s26 }
 0xafd   : > { %s4021_s24 = smov %s3591_s4  ;;  %43 = sbr.rel (!%p41_p2) target bundleno = 27 (0x1b), region = 209 }
 0xb02   :  { %1998 = vsyncpa [#allocation3], 1 }
 0xb03   :  { %2000 = vsyncpa [#allocation3 + $0x1], 1 }
 0xb04   :  { %2001 = vsyncpa [#allocation6], 1 }
 0xb05   :  { %2002 = vsyncpa [#allocation9], 1 }
 0xb06   :  { %2003 = vsyncpa [#allocation12], 1 }
 0xb07   :  { %2004 = vsyncpa [#allocation15], 1 }
 0xb08   :  { %2005 = vsyncpa [#allocation18], 1 }
 0xb09   :  { %2006 = vsyncpa [#allocation21], 1 }
 0xb0a   :  { %2007 = vsyncpa [#allocation24], 1 }
 0xb0b   :  { %2008 = vsyncpa [#allocation27], 1 }
 0xb0c   :  { %2009 = vsyncpa [#allocation4], 1 }
 0xb0d   :  { %2011 = vsyncpa [#allocation4 + $0x1], 1 }

</bundles_post_ra>
